<compile_context>
chip_gen: v7x
topology: tpu7x:2x2x1
jax: 0.10.0
libtpu: 0.0.40
codegen_flags: <defaults>
</compile_context>

<pallas_src>
import math

import jax
import jax.numpy as jnp
from jax.experimental import pallas as pl
from jax.experimental.pallas import tpu as pltpu


# ----------------------------------------------------------------------------
# Kernel factory
# ----------------------------------------------------------------------------
def _make_kernel(n_heads, d_model, seq_len, bt, eps=1e-6):
    D, S, BT = d_model, seq_len, bt
    dk = D // n_heads
    bf16 = jnp.bfloat16

    def layernorm(t, a, b):
        # Annotated-Transformer LayerNorm: a*(x-mean)/(std+eps)+b, unbiased std.
        # Exact division (review: keep approx reciprocal for softmax only).
        mu = jnp.mean(t, axis=-1, keepdims=True)
        var = jnp.sum((t - mu) ** 2, axis=-1, keepdims=True) * (1.0 / (D - 1))
        return a * (t - mu) / (jnp.sqrt(var) + eps) + b

    def kernel(pe_ref, x_ref, bias_ref,
               wqkv_ref, bqkv_ref, wo_ref, bo_ref,
               w1_ref, b1_ref, w2_ref, b2_ref,
               ln1a_ref, ln1b_ref, ln2a_ref, ln2b_ref,
               lnfa_ref, lnfb_ref,
               out_ref,
               x_sc):
        l = pl.program_id(1)

        # ---- first layer step: load x, add positional encoding -------------
        @pl.when(l == 0)
        def _():
            x0 = x_ref[...] + pe_ref[...][None]           # (BT, S, D)
            x_sc[...] = x0.reshape(BT * S, D)

        x = x_sc[...]                                     # (BT*S, D) f32 residual
        bias = bias_ref[...]                              # (BT, 1, S) additive mask

        # ---- self-attention sublayer: x + Wo(softmax(QK^T + bias) V) -------
        xn = layernorm(x, ln1a_ref[...], ln1b_ref[...]).astype(bf16)
        # fused QKV: single (D, 3D) matmul, bf16 cast once after the bias add
        qkv = (jnp.dot(xn, wqkv_ref[...], preferred_element_type=jnp.float32)
               + bqkv_ref[...]).astype(bf16)              # (BT*S, 3D) bf16
        qkv = qkv.reshape(BT, S, 3 * D)

        attn = jnp.zeros((BT * S, D), jnp.float32)
        for h in range(n_heads):                          # static unroll over heads
            lo = h * dk
            q_h = qkv[:, :, lo:lo + dk]                   # (BT, S, dk) bf16
            k_h = qkv[:, :, D + lo:D + lo + dk]
            v_h = qkv[:, :, 2 * D + lo:2 * D + lo + dk]
            s = jnp.einsum('bqd,bkd->bqk', q_h, k_h,
                           preferred_element_type=jnp.float32) + bias
            s = s - jnp.max(s, axis=-1, keepdims=True)
            p = jnp.exp(s)
            p = p * pl.reciprocal(jnp.sum(p, axis=-1, keepdims=True), approx=True)
            ctx_h = jnp.einsum('bqk,bkd->bqd', p.astype(bf16), v_h,
                               preferred_element_type=jnp.float32)  # (BT,S,dk)
            # accumulate the output projection per head: no ctx scratch,
            # no masked (<128-lane) stores; Wo row slice is sublane-aligned.
            attn = attn + jnp.dot(ctx_h.reshape(BT * S, dk).astype(bf16),
                                  wo_ref[lo:lo + dk, :],
                                  preferred_element_type=jnp.float32)
        x = x + attn + bo_ref[...]                        # dropout == identity

        # ---- feed-forward sublayer: x + W2(relu(W1 LN(x))) ------------------
        xn2 = layernorm(x, ln2a_ref[...], ln2b_ref[...]).astype(bf16)
        h1 = jnp.maximum(
            jnp.dot(xn2, w1_ref[...], preferred_element_type=jnp.float32)
            + b1_ref[...], 0.0)
        ff = jnp.dot(h1.astype(bf16), w2_ref[...],
                     preferred_element_type=jnp.float32) + b2_ref[...]
        x = x + ff
        x_sc[...] = x

        # ---- last layer step: final LayerNorm + mean over sequence ---------
        @pl.when(l == pl.num_programs(1) - 1)
        def _():
            xf = layernorm(x_sc[...], lnfa_ref[...], lnfb_ref[...])
            out_ref[...] = jnp.mean(xf.reshape(BT, S, D), axis=1, keepdims=True)

    return kernel


# ----------------------------------------------------------------------------
# VMEM budgeting & batch-tile selection
# ----------------------------------------------------------------------------
def _vmem_cap_bytes():
    """75% of physical VMEM per core (48 MiB on v7x, ~96 MiB on v5e/v6e)."""
    phys = 64 << 20
    try:
        phys = int(pltpu.get_tpu_info().vmem_capacity_bytes)
    except Exception:
        pass
    return (phys * 3) // 4


def _est_vmem_bytes(bt, s, d, f):
    """Footprint estimate incl. in-kernel intermediates (review fix)."""
    bf, f32 = 2, 4
    rows = bt * s
    # per-layer streamed weights (double-buffered by the pipeline)
    w_bf16 = (d * 3 * d + d * d + d * f + f * d) * bf          # wqkv, wo, w1, w2
    w_f32 = (3 * d + d + f + d + 4 * d) * f32                  # biases + LN scales
    io = (s * d + rows * d + bt * s + bt * d + 2 * d) * f32    # pe, x, bias, out, lnf
    # in-kernel live intermediates (single-buffered upper bound)
    inter = (rows * 3 * d * bf          # bf16 qkv
             + bt * s * s * f32         # per-head scores / probs
             + rows * d * f32           # attention accumulator
             + rows * f * f32           # f32 h1
             + rows * d * f32)          # xn / ff temporaries
    scratch = rows * d * f32            # residual stream carry
    return 2 * (w_bf16 + w_f32 + io) + inter + scratch + (4 << 20)


def _pick_bt(B, S, D, F, cap, max_rows=4096):
    """Largest divisor of B that fits the VMEM budget, keeping B//Bt >= 2
    (when possible) so the 'parallel' batch axis spans both v7x TensorCores."""
    limit = B if B < 2 else max(1, B // 2)
    best = 1
    for bt in range(1, limit + 1):
        if B % bt:
            continue
        if bt * S <= max_rows and _est_vmem_bytes(bt, S, D, F) <= cap:
            best = bt
    return best


# ----------------------------------------------------------------------------
# Wrapper
# ----------------------------------------------------------------------------
def transformer_encoder(x, mask, params, *, n_heads, n_layers, d_ff):
    B, S, D = x.shape
    L, F = n_layers, d_ff
    assert D % n_heads == 0
    dk = D // n_heads
    scale = 1.0 / math.sqrt(dk)
    bf16 = jnp.bfloat16

    cap = _vmem_cap_bytes()
    Bt = _pick_bt(B, S, D, F, cap)
    vmem_limit = int(min(max(_est_vmem_bytes(Bt, S, D, F), 16 << 20), cap))
    kernel = _make_kernel(n_heads, D, S, Bt)

    pe = params["pe"][:S].astype(jnp.float32)                             # (S, D)
    # Fused QKV projection with the 1/sqrt(dk) scale folded into Wq / bq.
    wqkv = jnp.concatenate([params["wq"] * scale, params["wk"], params["wv"]],
                           axis=-1).astype(bf16)                          # (L, D, 3D)
    bqkv = jnp.concatenate([params["bq"] * scale, params["bk"], params["bv"]],
                           axis=-1).astype(jnp.float32)                   # (L, 1, 3D)
    wo = params["wo"].astype(bf16)
    w1 = params["w1"].astype(bf16)
    w2 = params["w2"].astype(bf16)
    bo, b1, b2 = params["bo"], params["b1"], params["b2"]
    ln1a, ln1b = params["ln1a"], params["ln1b"]
    ln2a, ln2b = params["ln2a"], params["ln2b"]
    lnfa, lnfb = params["lnfa"], params["lnfb"]

    # additive attention bias: 0 where attendable, -1e9 where masked
    mask_bias = (mask.astype(jnp.float32) - 1.0) * 1e9                    # (B, 1, S)

    def rep2(a):          # small replicated 2-D array (pe, final LN params)
        return pl.BlockSpec(a.shape, lambda b, l: (0, 0))

    def per_layer(a):     # (L, r, c): stream one layer per step, squeeze leading dim
        return pl.BlockSpec((None, a.shape[1], a.shape[2]), lambda b, l: (l, 0, 0))

    in_specs = [
        rep2(pe),
        pl.BlockSpec((Bt, S, D), lambda b, l: (b, 0, 0)),   # x (one batch tile)
        pl.BlockSpec((Bt, 1, S), lambda b, l: (b, 0, 0)),   # additive mask bias
        per_layer(wqkv), per_layer(bqkv),
        per_layer(wo), per_layer(bo),
        per_layer(w1), per_layer(b1),
        per_layer(w2), per_layer(b2),
        per_layer(ln1a), per_layer(ln1b),
        per_layer(ln2a), per_layer(ln2b),
        rep2(lnfa), rep2(lnfb),
    ]

    out = pl.pallas_call(
        kernel,
        out_shape=jax.ShapeDtypeStruct((B, 1, D), jnp.float32),
        grid_spec=pltpu.PrefetchScalarGridSpec(
            num_scalar_prefetch=0,
            grid=(B // Bt, L),                       # layer axis innermost
            in_specs=in_specs,
            out_specs=pl.BlockSpec((Bt, 1, D), lambda b, l: (b, 0, 0)),
            scratch_shapes=[
                pltpu.VMEM((Bt * S, D), jnp.float32),   # residual stream carry
            ],
        ),
        compiler_params=pltpu.CompilerParams(
            dimension_semantics=("parallel", "arbitrary"),
            vmem_limit_bytes=vmem_limit,
        ),
    )(pe, x.astype(jnp.float32), mask_bias,
      wqkv, bqkv, wo, bo, w1, b1, w2, b2,
      ln1a, ln1b, ln2a, ln2b, lnfa, lnfb)
    return out[:, 0, :]                                     # (B, D)


# ----------------------------------------------------------------------------
# Deterministic parameter init (matches module __init__ shapes).
# ----------------------------------------------------------------------------
def init_params(key, d_model, d_ff, n_heads, n_layers, max_len=100):
    D, F, L = d_model, d_ff, n_layers

    def xavier(k, shape):
        fan_in, fan_out = shape[-2], shape[-1]
        bound = math.sqrt(6.0 / (fan_in + fan_out))
        return jax.random.uniform(k, shape, jnp.float32, -bound, bound)

    def lin_bias(k, fan_in, shape):
        bound = 1.0 / math.sqrt(fan_in)
        return jax.random.uniform(k, shape, jnp.float32, -bound, bound)

    ks = jax.random.split(key, 12)
    p = {
        "wq": xavier(ks[0], (L, D, D)), "bq": lin_bias(ks[1], D, (L, 1, D)),
        "wk": xavier(ks[2], (L, D, D)), "bk": lin_bias(ks[3], D, (L, 1, D)),
        "wv": xavier(ks[4], (L, D, D)), "bv": lin_bias(ks[5], D, (L, 1, D)),
        "wo": xavier(ks[6], (L, D, D)), "bo": lin_bias(ks[7], D, (L, 1, D)),
        "w1": xavier(ks[8], (L, D, F)), "b1": lin_bias(ks[9], D, (L, 1, F)),
        "w2": xavier(ks[10], (L, F, D)), "b2": lin_bias(ks[11], F, (L, 1, D)),
        "ln1a": jnp.ones((L, 1, D), jnp.float32), "ln1b": jnp.zeros((L, 1, D), jnp.float32),
        "ln2a": jnp.ones((L, 1, D), jnp.float32), "ln2b": jnp.zeros((L, 1, D), jnp.float32),
        "lnfa": jnp.ones((1, D), jnp.float32), "lnfb": jnp.zeros((1, D), jnp.float32),
    }
    position = jnp.arange(max_len, dtype=jnp.float32)[:, None]
    div_term = jnp.exp(jnp.arange(0, D, 2, dtype=jnp.float32) * -(math.log(10000.0) / D))
    pe = jnp.zeros((max_len, D), jnp.float32)
    pe = pe.at[:, 0::2].set(jnp.sin(position * div_term))
    pe = pe.at[:, 1::2].set(jnp.cos(position * div_term))
    p["pe"] = pe
    return p


# ----------------------------------------------------------------------------
# Pure-JAX reference with the same bf16-in / f32-accumulate matmul convention.
# ----------------------------------------------------------------------------
def reference(x, mask, params, n_heads, n_layers, eps=1e-6):
    B, S, D = x.shape
    dk = D // n_heads
    scale = 1.0 / math.sqrt(dk)
    bf = jnp.bfloat16

    def ln(t, a, b):
        mu = t.mean(-1, keepdims=True)
        var = ((t - mu) ** 2).sum(-1, keepdims=True) / (D - 1)
        return a * (t - mu) / (jnp.sqrt(var) + eps) + b

    bias = (mask.astype(jnp.float32) - 1.0) * 1e9            # (B,1,S)
    h = x + params["pe"][:S][None]
    for l in range(n_layers):
        xn = ln(h, params["ln1a"][l], params["ln1b"][l]).astype(bf)
        q = jnp.einsum('bsd,de->bse', xn, (params["wq"][l] * scale).astype(bf),
                       preferred_element_type=jnp.float32) + params["bq"][l] * scale
        k = jnp.einsum('bsd,de->bse', xn, params["wk"][l].astype(bf),
                       preferred_element_type=jnp.float32) + params["bk"][l]
        v = jnp.einsum('bsd,de->bse', xn, params["wv"][l].astype(bf),
                       preferred_element_type=jnp.float32) + params["bv"][l]
        sp = lambda t: t.reshape(B, S, n_heads, dk).transpose(0, 2, 1, 3).astype(bf)
        qh, kh, vh = sp(q), sp(k), sp(v)
        s = jnp.einsum("bhqd,bhkd->bhqk", qh, kh,
                       preferred_element_type=jnp.float32) + bias[:, None]
        p = jax.nn.softmax(s, axis=-1)
        ctx = jnp.einsum("bhqk,bhkd->bhqd", p.astype(bf), vh,
                         preferred_element_type=jnp.float32)
        ctx = ctx.transpose(0, 2, 1, 3).reshape(B, S, D)
        h = h + jnp.einsum('bsd,de->bse', ctx.astype(bf), params["wo"][l].astype(bf),
                           preferred_element_type=jnp.float32) + params["bo"][l]
        xn2 = ln(h, params["ln2a"][l], params["ln2b"][l]).astype(bf)
        h1 = jax.nn.relu(jnp.einsum('bsd,df->bsf', xn2, params["w1"][l].astype(bf),
                                    preferred_element_type=jnp.float32) + params["b1"][l])
        ff = jnp.einsum('bsf,fd->bsd', h1.astype(bf), params["w2"][l].astype(bf),
                        preferred_element_type=jnp.float32) + params["b2"][l]
        h = h + ff
    h = ln(h, params["lnfa"], params["lnfb"])
    return h.mean(axis=1)


if __name__ == "__main__":
    B, S, D, F, H, L = 4, 8, 128, 256, 2, 2
    key = jax.random.PRNGKey(0)
    kp, kx = jax.random.split(key)
    params = init_params(kp, D, F, H, L, max_len=100)
    x = jax.random.normal(kx, (B, S, D), jnp.float32)
    mask = jnp.ones((B, 1, S), jnp.float32)
    mask = mask.at[1, 0, 5:].set(0.0)        # mask the tail of batch element 1

    out = transformer_encoder(x, mask, params, n_heads=H, n_layers=L, d_ff=F)
    out = jax.block_until_ready(out)
    assert out.shape == (B, D)

    ref = reference(x, mask, params, H, L)
    max_diff = float(jnp.max(jnp.abs(out - ref)))
    assert jnp.allclose(out, ref, atol=2e-2, rtol=2e-2), (
        f"mismatch vs pure-JAX reference, max abs diff = {max_diff}")
    print("KERNEL_OK")
</pallas_src>

<mosaic_0001>
module attributes {stable_mosaic.version = 11 : i64} {
  func.func @kernel(%arg0: i32, %arg1: i32, %arg2: memref<8x128xf32, #tpu.memory_space<vmem>>, %arg3: memref<2x8x128xf32, #tpu.memory_space<vmem>>, %arg4: memref<2x1x8xf32, #tpu.memory_space<vmem>>, %arg5: memref<1x128x384xbf16, #tpu.memory_space<vmem>>, %arg6: memref<1x1x384xf32, #tpu.memory_space<vmem>>, %arg7: memref<1x128x128xbf16, #tpu.memory_space<vmem>>, %arg8: memref<1x1x128xf32, #tpu.memory_space<vmem>>, %arg9: memref<1x128x256xbf16, #tpu.memory_space<vmem>>, %arg10: memref<1x1x256xf32, #tpu.memory_space<vmem>>, %arg11: memref<1x256x128xbf16, #tpu.memory_space<vmem>>, %arg12: memref<1x1x128xf32, #tpu.memory_space<vmem>>, %arg13: memref<1x1x128xf32, #tpu.memory_space<vmem>>, %arg14: memref<1x1x128xf32, #tpu.memory_space<vmem>>, %arg15: memref<1x1x128xf32, #tpu.memory_space<vmem>>, %arg16: memref<1x1x128xf32, #tpu.memory_space<vmem>>, %arg17: memref<1x128xf32, #tpu.memory_space<vmem>>, %arg18: memref<1x128xf32, #tpu.memory_space<vmem>>, %arg19: memref<2x1x128xf32, #tpu.memory_space<vmem>>, %arg20: memref<16x128xf32, #tpu.memory_space<vmem>>) attributes {dimension_semantics = [#tpu.dimension_semantics<parallel>, #tpu.dimension_semantics<arbitrary>], iteration_bounds = array<i64: 2, 2>, scalar_prefetch = 0 : i64, scratch_operands = 1 : i64, tpu.core_type = #tpu.core_type<tc>, window_params = [{pipeline_mode = #tpu.pipeline_mode<synchronous>, transform_indices = @transform_0, window_bounds = array<i64: 8, 128>}, {transform_indices = @transform_1, window_bounds = array<i64: 2, 8, 128>}, {transform_indices = @transform_2, window_bounds = array<i64: 2, 1, 8>}, {transform_indices = @transform_3, window_bounds = array<i64: 1, 128, 384>}, {transform_indices = @transform_4, window_bounds = array<i64: 1, 1, 384>}, {transform_indices = @transform_5, window_bounds = array<i64: 1, 128, 128>}, {transform_indices = @transform_6, window_bounds = array<i64: 1, 1, 128>}, {transform_indices = @transform_7, window_bounds = array<i64: 1, 128, 256>}, {transform_indices = @transform_8, window_bounds = array<i64: 1, 1, 256>}, {transform_indices = @transform_9, window_bounds = array<i64: 1, 256, 128>}, {transform_indices = @transform_10, window_bounds = array<i64: 1, 1, 128>}, {transform_indices = @transform_11, window_bounds = array<i64: 1, 1, 128>}, {transform_indices = @transform_12, window_bounds = array<i64: 1, 1, 128>}, {transform_indices = @transform_13, window_bounds = array<i64: 1, 1, 128>}, {transform_indices = @transform_14, window_bounds = array<i64: 1, 1, 128>}, {pipeline_mode = #tpu.pipeline_mode<synchronous>, transform_indices = @transform_15, window_bounds = array<i64: 1, 128>}, {pipeline_mode = #tpu.pipeline_mode<synchronous>, transform_indices = @transform_16, window_bounds = array<i64: 1, 128>}, {transform_indices = @transform_17, window_bounds = array<i64: 2, 1, 128>}]} {
    %c0_i32 = arith.constant 0 : i32
    %0 = arith.cmpi eq, %arg1, %c0_i32 : i32
    %1 = arith.extui %0 : i1 to i32
    %c0_i32_0 = arith.constant 0 : i32
    %2 = arith.cmpi ne, %1, %c0_i32_0 : i32
    scf.if %2 {
      %c0_70 = arith.constant 0 : index
      %c0_71 = arith.constant 0 : index
      %c0_72 = arith.constant 0 : index
      %144 = vector.load %arg3[%c0_70, %c0_71, %c0_72] : memref<2x8x128xf32, #tpu.memory_space<vmem>>, vector<2x8x128xf32>
      %c0_73 = arith.constant 0 : index
      %c0_74 = arith.constant 0 : index
      %145 = vector.load %arg2[%c0_73, %c0_74] : memref<8x128xf32, #tpu.memory_space<vmem>>, vector<8x128xf32>
      %146 = vector.shape_cast %145 : vector<8x128xf32> to vector<1x8x128xf32>
      %147 = vector.broadcast %146 : vector<1x8x128xf32> to vector<2x8x128xf32>
      %148 = arith.addf %144, %147 : vector<2x8x128xf32>
      %149 = vector.shape_cast %148 : vector<2x8x128xf32> to vector<16x128xf32>
      %c0_75 = arith.constant 0 : index
      %c0_76 = arith.constant 0 : index
      %150 = vector.load %arg20[%c0_75, %c0_76] : memref<16x128xf32, #tpu.memory_space<vmem>>, vector<16x128xf32>
      tpu.vector_store %arg20[%c0_75, %c0_76], %149 {strides = array<i32>} : memref<16x128xf32, #tpu.memory_space<vmem>>, vector<16x128xf32>,
    } else {
    }
    %c0 = arith.constant 0 : index
    %c0_1 = arith.constant 0 : index
    %3 = vector.load %arg20[%c0, %c0_1] : memref<16x128xf32, #tpu.memory_space<vmem>>, vector<16x128xf32>
    %c0_2 = arith.constant 0 : index
    %c0_3 = arith.constant 0 : index
    %c0_4 = arith.constant 0 : index
    %4 = vector.load %arg4[%c0_2, %c0_3, %c0_4] : memref<2x1x8xf32, #tpu.memory_space<vmem>>, vector<2x1x8xf32>
    %c0_5 = arith.constant 0 : index
    %c0_6 = arith.constant 0 : index
    %c0_7 = arith.constant 0 : index
    %5 = vector.load %arg13[%c0_5, %c0_6, %c0_7] : memref<1x1x128xf32, #tpu.memory_space<vmem>>, vector<1x1x128xf32>
    %6 = vector.shape_cast %5 : vector<1x1x128xf32> to vector<1x128xf32>
    %c0_8 = arith.constant 0 : index
    %c0_9 = arith.constant 0 : index
    %c0_10 = arith.constant 0 : index
    %7 = vector.load %arg14[%c0_8, %c0_9, %c0_10] : memref<1x1x128xf32, #tpu.memory_space<vmem>>, vector<1x1x128xf32>
    %8 = vector.shape_cast %7 : vector<1x1x128xf32> to vector<1x128xf32>
    %cst = arith.constant dense<0.000000e+00> : vector<16xf32>
    %9 = vector.multi_reduction <add>, %3, %cst [1] : vector<16x128xf32> to vector<16xf32>
    %10 = vector.shape_cast %9 : vector<16xf32> to vector<16x1xf32>
    %cst_11 = arith.constant 1.280000e+02 : f32
    %11 = vector.broadcast %cst_11 : f32 to vector<16x1xf32>
    %12 = arith.divf %10, %11 : vector<16x1xf32>
    %13 = vector.broadcast %12 : vector<16x1xf32> to vector<16x128xf32>
    %14 = arith.subf %3, %13 : vector<16x128xf32>
    %15 = arith.mulf %14, %14 : vector<16x128xf32>
    %cst_12 = arith.constant dense<0.000000e+00> : vector<16xf32>
    %16 = vector.multi_reduction <add>, %15, %cst_12 [1] : vector<16x128xf32> to vector<16xf32>
    %17 = vector.shape_cast %16 : vector<16xf32> to vector<16x1xf32>
    %cst_13 = arith.constant 0.00787401571 : f32
    %18 = vector.broadcast %cst_13 : f32 to vector<16x1xf32>
    %19 = arith.mulf %17, %18 : vector<16x1xf32>
    %20 = vector.broadcast %12 : vector<16x1xf32> to vector<16x128xf32>
    %21 = arith.subf %3, %20 : vector<16x128xf32>
    %22 = vector.broadcast %6 : vector<1x128xf32> to vector<16x128xf32>
    %23 = arith.mulf %22, %21 : vector<16x128xf32>
    %24 = math.sqrt %19 : vector<16x1xf32>
    %cst_14 = arith.constant 9.99999997E-7 : f32
    %25 = vector.broadcast %cst_14 : f32 to vector<16x1xf32>
    %26 = arith.addf %24, %25 : vector<16x1xf32>
    %27 = vector.broadcast %26 : vector<16x1xf32> to vector<16x128xf32>
    %28 = arith.divf %23, %27 : vector<16x128xf32>
    %29 = vector.broadcast %8 : vector<1x128xf32> to vector<16x128xf32>
    %30 = arith.addf %28, %29 : vector<16x128xf32>
    %31 = arith.truncf %30 : vector<16x128xf32> to vector<16x128xbf16>
    %c0_15 = arith.constant 0 : index
    %c0_16 = arith.constant 0 : index
    %c0_17 = arith.constant 0 : index
    %32 = vector.load %arg5[%c0_15, %c0_16, %c0_17] : memref<1x128x384xbf16, #tpu.memory_space<vmem>>, vector<1x128x384xbf16>
    %33 = vector.shape_cast %32 : vector<1x128x384xbf16> to vector<128x384xbf16>
    %cst_18 = arith.constant dense<0.000000e+00> : vector<16x384xf32>
    %34 = tpu.matmul %31, %33, %cst_18 {dimension_numbers = #tpu.dot_dimension_numbers<[1], [0], [0], [1], [0, 0, 1, 1], [], []>} : vector<16x128xbf16>, vector<128x384xbf16>, vector<16x384xf32> -> vector<16x384xf32>
    %c0_19 = arith.constant 0 : index
    %c0_20 = arith.constant 0 : index
    %c0_21 = arith.constant 0 : index
    %35 = vector.load %arg6[%c0_19, %c0_20, %c0_21] : memref<1x1x384xf32, #tpu.memory_space<vmem>>, vector<1x1x384xf32>
    %36 = vector.shape_cast %35 : vector<1x1x384xf32> to vector<1x384xf32>
    %37 = vector.broadcast %36 : vector<1x384xf32> to vector<16x384xf32>
    %38 = arith.addf %34, %37 : vector<16x384xf32>
    %39 = arith.truncf %38 : vector<16x384xf32> to vector<16x384xbf16>
    %40 = vector.shape_cast %39 : vector<16x384xbf16> to vector<2x8x384xbf16>
    %cst_22 = arith.constant 0.000000e+00 : f32
    %41 = vector.broadcast %cst_22 : f32 to vector<16x128xf32>
    %42 = vector.extract_strided_slice %40 {offsets = [0, 0, 0], sizes = [2, 8, 64], strides = [1, 1, 1]} : vector<2x8x384xbf16> to vector<2x8x64xbf16>
    %43 = vector.extract_strided_slice %40 {offsets = [0, 0, 128], sizes = [2, 8, 64], strides = [1, 1, 1]} : vector<2x8x384xbf16> to vector<2x8x64xbf16>
    %44 = vector.extract_strided_slice %40 {offsets = [0, 0, 256], sizes = [2, 8, 64], strides = [1, 1, 1]} : vector<2x8x384xbf16> to vector<2x8x64xbf16>
    "tpu.trace_start"() <{level = 10 : i32, message = "bqd,bkd->bqk"}> : () -> ()
    %cst_23 = arith.constant dense<0.000000e+00> : vector<2x8x8xf32>
    %45 = tpu.matmul %42, %43, %cst_23 {dimension_numbers = #tpu.dot_dimension_numbers<[2], [2], [1], [1], [0, 0, 0, 1, 1, 1], [0], [0]>} : vector<2x8x64xbf16>, vector<2x8x64xbf16>, vector<2x8x8xf32> -> vector<2x8x8xf32>
    "tpu.trace_stop"() : () -> ()
    %46 = vector.broadcast %4 : vector<2x1x8xf32> to vector<2x8x8xf32>
    %47 = arith.addf %45, %46 : vector<2x8x8xf32>
    %cst_24 = arith.constant dense<0xFF800000> : vector<2x8xf32>
    %48 = vector.multi_reduction <maximumf>, %47, %cst_24 [2] : vector<2x8x8xf32> to vector<2x8xf32>
    %49 = vector.shape_cast %48 : vector<2x8xf32> to vector<2x8x1xf32>
    %50 = vector.broadcast %49 : vector<2x8x1xf32> to vector<2x8x8xf32>
    %51 = arith.subf %47, %50 : vector<2x8x8xf32>
    %52 = math.exp %51 : vector<2x8x8xf32>
    %cst_25 = arith.constant dense<0.000000e+00> : vector<2x8xf32>
    %53 = vector.multi_reduction <add>, %52, %cst_25 [2] : vector<2x8x8xf32> to vector<2x8xf32>
    %54 = vector.shape_cast %53 : vector<2x8xf32> to vector<2x8x1xf32>
    %55 = tpu.reciprocal %54 {approx = true} : vector<2x8x1xf32> -> vector<2x8x1xf32>
    %56 = vector.broadcast %55 : vector<2x8x1xf32> to vector<2x8x8xf32>
    %57 = arith.mulf %52, %56 : vector<2x8x8xf32>
    %58 = arith.truncf %57 : vector<2x8x8xf32> to vector<2x8x8xbf16>
    "tpu.trace_start"() <{level = 10 : i32, message = "bqk,bkd->bqd"}> : () -> ()
    %cst_26 = arith.constant dense<0.000000e+00> : vector<2x8x64xf32>
    %59 = tpu.matmul %58, %44, %cst_26 {dimension_numbers = #tpu.dot_dimension_numbers<[2], [1], [1], [2], [0, 0, 0, 1, 1, 2], [0], [0]>} : vector<2x8x8xbf16>, vector<2x8x64xbf16>, vector<2x8x64xf32> -> vector<2x8x64xf32>
    "tpu.trace_stop"() : () -> ()
    %60 = vector.shape_cast %59 : vector<2x8x64xf32> to vector<16x64xf32>
    %61 = arith.truncf %60 : vector<16x64xf32> to vector<16x64xbf16>
    %c0_27 = arith.constant 0 : index
    %c0_28 = arith.constant 0 : index
    %c0_29 = arith.constant 0 : index
    %62 = vector.load %arg7[%c0_27, %c0_28, %c0_29] : memref<1x128x128xbf16, #tpu.memory_space<vmem>>, vector<1x64x128xbf16>
    %63 = vector.shape_cast %62 : vector<1x64x128xbf16> to vector<64x128xbf16>
    %cst_30 = arith.constant dense<0.000000e+00> : vector<16x128xf32>
    %64 = tpu.matmul %61, %63, %cst_30 {dimension_numbers = #tpu.dot_dimension_numbers<[1], [0], [0], [1], [0, 0, 1, 1], [], []>} : vector<16x64xbf16>, vector<64x128xbf16>, vector<16x128xf32> -> vector<16x128xf32>
    %65 = arith.addf %41, %64 : vector<16x128xf32>
    %66 = vector.extract_strided_slice %40 {offsets = [0, 0, 64], sizes = [2, 8, 64], strides = [1, 1, 1]} : vector<2x8x384xbf16> to vector<2x8x64xbf16>
    %67 = vector.extract_strided_slice %40 {offsets = [0, 0, 192], sizes = [2, 8, 64], strides = [1, 1, 1]} : vector<2x8x384xbf16> to vector<2x8x64xbf16>
    %68 = vector.extract_strided_slice %40 {offsets = [0, 0, 320], sizes = [2, 8, 64], strides = [1, 1, 1]} : vector<2x8x384xbf16> to vector<2x8x64xbf16>
    "tpu.trace_start"() <{level = 10 : i32, message = "bqd,bkd->bqk"}> : () -> ()
    %cst_31 = arith.constant dense<0.000000e+00> : vector<2x8x8xf32>
    %69 = tpu.matmul %66, %67, %cst_31 {dimension_numbers = #tpu.dot_dimension_numbers<[2], [2], [1], [1], [0, 0, 0, 1, 1, 1], [0], [0]>} : vector<2x8x64xbf16>, vector<2x8x64xbf16>, vector<2x8x8xf32> -> vector<2x8x8xf32>
    "tpu.trace_stop"() : () -> ()
    %70 = vector.broadcast %4 : vector<2x1x8xf32> to vector<2x8x8xf32>
    %71 = arith.addf %69, %70 : vector<2x8x8xf32>
    %cst_32 = arith.constant dense<0xFF800000> : vector<2x8xf32>
    %72 = vector.multi_reduction <maximumf>, %71, %cst_32 [2] : vector<2x8x8xf32> to vector<2x8xf32>
    %73 = vector.shape_cast %72 : vector<2x8xf32> to vector<2x8x1xf32>
    %74 = vector.broadcast %73 : vector<2x8x1xf32> to vector<2x8x8xf32>
    %75 = arith.subf %71, %74 : vector<2x8x8xf32>
    %76 = math.exp %75 : vector<2x8x8xf32>
    %cst_33 = arith.constant dense<0.000000e+00> : vector<2x8xf32>
    %77 = vector.multi_reduction <add>, %76, %cst_33 [2] : vector<2x8x8xf32> to vector<2x8xf32>
    %78 = vector.shape_cast %77 : vector<2x8xf32> to vector<2x8x1xf32>
    %79 = tpu.reciprocal %78 {approx = true} : vector<2x8x1xf32> -> vector<2x8x1xf32>
    %80 = vector.broadcast %79 : vector<2x8x1xf32> to vector<2x8x8xf32>
    %81 = arith.mulf %76, %80 : vector<2x8x8xf32>
    %82 = arith.truncf %81 : vector<2x8x8xf32> to vector<2x8x8xbf16>
    "tpu.trace_start"() <{level = 10 : i32, message = "bqk,bkd->bqd"}> : () -> ()
    %cst_34 = arith.constant dense<0.000000e+00> : vector<2x8x64xf32>
    %83 = tpu.matmul %82, %68, %cst_34 {dimension_numbers = #tpu.dot_dimension_numbers<[2], [1], [1], [2], [0, 0, 0, 1, 1, 2], [0], [0]>} : vector<2x8x8xbf16>, vector<2x8x64xbf16>, vector<2x8x64xf32> -> vector<2x8x64xf32>
    "tpu.trace_stop"() : () -> ()
    %84 = vector.shape_cast %83 : vector<2x8x64xf32> to vector<16x64xf32>
    %85 = arith.truncf %84 : vector<16x64xf32> to vector<16x64xbf16>
    %c0_35 = arith.constant 0 : index
    %c64 = arith.constant 64 : index
    %c0_36 = arith.constant 0 : index
    %86 = vector.load %arg7[%c0_35, %c64, %c0_36] : memref<1x128x128xbf16, #tpu.memory_space<vmem>>, vector<1x64x128xbf16>
    %87 = vector.shape_cast %86 : vector<1x64x128xbf16> to vector<64x128xbf16>
    %cst_37 = arith.constant dense<0.000000e+00> : vector<16x128xf32>
    %88 = tpu.matmul %85, %87, %cst_37 {dimension_numbers = #tpu.dot_dimension_numbers<[1], [0], [0], [1], [0, 0, 1, 1], [], []>} : vector<16x64xbf16>, vector<64x128xbf16>, vector<16x128xf32> -> vector<16x128xf32>
    %89 = arith.addf %65, %88 : vector<16x128xf32>
    %90 = arith.addf %3, %89 : vector<16x128xf32>
    %c0_38 = arith.constant 0 : index
    %c0_39 = arith.constant 0 : index
    %c0_40 = arith.constant 0 : index
    %91 = vector.load %arg8[%c0_38, %c0_39, %c0_40] : memref<1x1x128xf32, #tpu.memory_space<vmem>>, vector<1x1x128xf32>
    %92 = vector.shape_cast %91 : vector<1x1x128xf32> to vector<1x128xf32>
    %93 = vector.broadcast %92 : vector<1x128xf32> to vector<16x128xf32>
    %94 = arith.addf %90, %93 : vector<16x128xf32>
    %c0_41 = arith.constant 0 : index
    %c0_42 = arith.constant 0 : index
    %c0_43 = arith.constant 0 : index
    %95 = vector.load %arg15[%c0_41, %c0_42, %c0_43] : memref<1x1x128xf32, #tpu.memory_space<vmem>>, vector<1x1x128xf32>
    %96 = vector.shape_cast %95 : vector<1x1x128xf32> to vector<1x128xf32>
    %c0_44 = arith.constant 0 : index
    %c0_45 = arith.constant 0 : index
    %c0_46 = arith.constant 0 : index
    %97 = vector.load %arg16[%c0_44, %c0_45, %c0_46] : memref<1x1x128xf32, #tpu.memory_space<vmem>>, vector<1x1x128xf32>
    %98 = vector.shape_cast %97 : vector<1x1x128xf32> to vector<1x128xf32>
    %cst_47 = arith.constant dense<0.000000e+00> : vector<16xf32>
    %99 = vector.multi_reduction <add>, %94, %cst_47 [1] : vector<16x128xf32> to vector<16xf32>
    %100 = vector.shape_cast %99 : vector<16xf32> to vector<16x1xf32>
    %cst_48 = arith.constant 1.280000e+02 : f32
    %101 = vector.broadcast %cst_48 : f32 to vector<16x1xf32>
    %102 = arith.divf %100, %101 : vector<16x1xf32>
    %103 = vector.broadcast %102 : vector<16x1xf32> to vector<16x128xf32>
    %104 = arith.subf %94, %103 : vector<16x128xf32>
    %105 = arith.mulf %104, %104 : vector<16x128xf32>
    %cst_49 = arith.constant dense<0.000000e+00> : vector<16xf32>
    %106 = vector.multi_reduction <add>, %105, %cst_49 [1] : vector<16x128xf32> to vector<16xf32>
    %107 = vector.shape_cast %106 : vector<16xf32> to vector<16x1xf32>
    %cst_50 = arith.constant 0.00787401571 : f32
    %108 = vector.broadcast %cst_50 : f32 to vector<16x1xf32>
    %109 = arith.mulf %107, %108 : vector<16x1xf32>
    %110 = vector.broadcast %102 : vector<16x1xf32> to vector<16x128xf32>
    %111 = arith.subf %94, %110 : vector<16x128xf32>
    %112 = vector.broadcast %96 : vector<1x128xf32> to vector<16x128xf32>
    %113 = arith.mulf %112, %111 : vector<16x128xf32>
    %114 = math.sqrt %109 : vector<16x1xf32>
    %cst_51 = arith.constant 9.99999997E-7 : f32
    %115 = vector.broadcast %cst_51 : f32 to vector<16x1xf32>
    %116 = arith.addf %114, %115 : vector<16x1xf32>
    %117 = vector.broadcast %116 : vector<16x1xf32> to vector<16x128xf32>
    %118 = arith.divf %113, %117 : vector<16x128xf32>
    %119 = vector.broadcast %98 : vector<1x128xf32> to vector<16x128xf32>
    %120 = arith.addf %118, %119 : vector<16x128xf32>
    %121 = arith.truncf %120 : vector<16x128xf32> to vector<16x128xbf16>
    %c0_52 = arith.constant 0 : index
    %c0_53 = arith.constant 0 : index
    %c0_54 = arith.constant 0 : index
    %122 = vector.load %arg9[%c0_52, %c0_53, %c0_54] : memref<1x128x256xbf16, #tpu.memory_space<vmem>>, vector<1x128x256xbf16>
    %123 = vector.shape_cast %122 : vector<1x128x256xbf16> to vector<128x256xbf16>
    %cst_55 = arith.constant dense<0.000000e+00> : vector<16x256xf32>
    %124 = tpu.matmul %121, %123, %cst_55 {dimension_numbers = #tpu.dot_dimension_numbers<[1], [0], [0], [1], [0, 0, 1, 1], [], []>} : vector<16x128xbf16>, vector<128x256xbf16>, vector<16x256xf32> -> vector<16x256xf32>
    %c0_56 = arith.constant 0 : index
    %c0_57 = arith.constant 0 : index
    %c0_58 = arith.constant 0 : index
    %125 = vector.load %arg10[%c0_56, %c0_57, %c0_58] : memref<1x1x256xf32, #tpu.memory_space<vmem>>, vector<1x1x256xf32>
    %126 = vector.shape_cast %125 : vector<1x1x256xf32> to vector<1x256xf32>
    %127 = vector.broadcast %126 : vector<1x256xf32> to vector<16x256xf32>
    %128 = arith.addf %124, %127 : vector<16x256xf32>
    %cst_59 = arith.constant 0.000000e+00 : f32
    %129 = vector.broadcast %cst_59 : f32 to vector<16x256xf32>
    %130 = arith.maximumf %128, %129 : vector<16x256xf32>
    %131 = arith.truncf %130 : vector<16x256xf32> to vector<16x256xbf16>
    %c0_60 = arith.constant 0 : index
    %c0_61 = arith.constant 0 : index
    %c0_62 = arith.constant 0 : index
    %132 = vector.load %arg11[%c0_60, %c0_61, %c0_62] : memref<1x256x128xbf16, #tpu.memory_space<vmem>>, vector<1x256x128xbf16>
    %133 = vector.shape_cast %132 : vector<1x256x128xbf16> to vector<256x128xbf16>
    %cst_63 = arith.constant dense<0.000000e+00> : vector<16x128xf32>
    %134 = tpu.matmul %131, %133, %cst_63 {dimension_numbers = #tpu.dot_dimension_numbers<[1], [0], [0], [1], [0, 0, 1, 1], [], []>} : vector<16x256xbf16>, vector<256x128xbf16>, vector<16x128xf32> -> vector<16x128xf32>
    %c0_64 = arith.constant 0 : index
    %c0_65 = arith.constant 0 : index
    %c0_66 = arith.constant 0 : index
    %135 = vector.load %arg12[%c0_64, %c0_65, %c0_66] : memref<1x1x128xf32, #tpu.memory_space<vmem>>, vector<1x1x128xf32>
    %136 = vector.shape_cast %135 : vector<1x1x128xf32> to vector<1x128xf32>
    %137 = vector.broadcast %136 : vector<1x128xf32> to vector<16x128xf32>
    %138 = arith.addf %134, %137 : vector<16x128xf32>
    %139 = arith.addf %94, %138 : vector<16x128xf32>
    %c0_67 = arith.constant 0 : index
    %c0_68 = arith.constant 0 : index
    %140 = vector.load %arg20[%c0_67, %c0_68] : memref<16x128xf32, #tpu.memory_space<vmem>>, vector<16x128xf32>
    tpu.vector_store %arg20[%c0_67, %c0_68], %139 {strides = array<i32>} : memref<16x128xf32, #tpu.memory_space<vmem>>, vector<16x128xf32>,
    %c1_i32 = arith.constant 1 : i32
    %141 = arith.cmpi eq, %arg1, %c1_i32 : i32
    %142 = arith.extui %141 : i1 to i32
    %c0_i32_69 = arith.constant 0 : i32
    %143 = arith.cmpi ne, %142, %c0_i32_69 : i32
    scf.if %143 {
      %c0_70 = arith.constant 0 : index
      %c0_71 = arith.constant 0 : index
      %144 = vector.load %arg20[%c0_70, %c0_71] : memref<16x128xf32, #tpu.memory_space<vmem>>, vector<16x128xf32>
      %c0_72 = arith.constant 0 : index
      %c0_73 = arith.constant 0 : index
      %145 = vector.load %arg17[%c0_72, %c0_73] : memref<1x128xf32, #tpu.memory_space<vmem>>, vector<1x128xf32>
      %c0_74 = arith.constant 0 : index
      %c0_75 = arith.constant 0 : index
      %146 = vector.load %arg18[%c0_74, %c0_75] : memref<1x128xf32, #tpu.memory_space<vmem>>, vector<1x128xf32>
      %cst_76 = arith.constant dense<0.000000e+00> : vector<16xf32>
      %147 = vector.multi_reduction <add>, %144, %cst_76 [1] : vector<16x128xf32> to vector<16xf32>
      %148 = vector.shape_cast %147 : vector<16xf32> to vector<16x1xf32>
      %cst_77 = arith.constant 1.280000e+02 : f32
      %149 = vector.broadcast %cst_77 : f32 to vector<16x1xf32>
      %150 = arith.divf %148, %149 : vector<16x1xf32>
      %151 = vector.broadcast %150 : vector<16x1xf32> to vector<16x128xf32>
      %152 = arith.subf %144, %151 : vector<16x128xf32>
      %153 = arith.mulf %152, %152 : vector<16x128xf32>
      %cst_78 = arith.constant dense<0.000000e+00> : vector<16xf32>
      %154 = vector.multi_reduction <add>, %153, %cst_78 [1] : vector<16x128xf32> to vector<16xf32>
      %155 = vector.shape_cast %154 : vector<16xf32> to vector<16x1xf32>
      %cst_79 = arith.constant 0.00787401571 : f32
      %156 = vector.broadcast %cst_79 : f32 to vector<16x1xf32>
      %157 = arith.mulf %155, %156 : vector<16x1xf32>
      %158 = vector.broadcast %150 : vector<16x1xf32> to vector<16x128xf32>
      %159 = arith.subf %144, %158 : vector<16x128xf32>
      %160 = vector.broadcast %145 : vector<1x128xf32> to vector<16x128xf32>
      %161 = arith.mulf %160, %159 : vector<16x128xf32>
      %162 = math.sqrt %157 : vector<16x1xf32>
      %cst_80 = arith.constant 9.99999997E-7 : f32
      %163 = vector.broadcast %cst_80 : f32 to vector<16x1xf32>
      %164 = arith.addf %162, %163 : vector<16x1xf32>
      %165 = vector.broadcast %164 : vector<16x1xf32> to vector<16x128xf32>
      %166 = arith.divf %161, %165 : vector<16x128xf32>
      %167 = vector.broadcast %146 : vector<1x128xf32> to vector<16x128xf32>
      %168 = arith.addf %166, %167 : vector<16x128xf32>
      %169 = vector.shape_cast %168 : vector<16x128xf32> to vector<2x8x128xf32>
      %cst_81 = arith.constant dense<0.000000e+00> : vector<2x128xf32>
      %170 = vector.multi_reduction <add>, %169, %cst_81 [1] : vector<2x8x128xf32> to vector<2x128xf32>
      %171 = vector.shape_cast %170 : vector<2x128xf32> to vector<2x1x128xf32>
      %cst_82 = arith.constant 8.000000e+00 : f32
      %172 = vector.broadcast %cst_82 : f32 to vector<2x1x128xf32>
      %173 = arith.divf %171, %172 : vector<2x1x128xf32>
      %c0_83 = arith.constant 0 : index
      %c0_84 = arith.constant 0 : index
      %c0_85 = arith.constant 0 : index
      %174 = vector.load %arg19[%c0_83, %c0_84, %c0_85] : memref<2x1x128xf32, #tpu.memory_space<vmem>>, vector<2x1x128xf32>
      tpu.vector_store %arg19[%c0_83, %c0_84, %c0_85], %173 {strides = array<i32>} : memref<2x1x128xf32, #tpu.memory_space<vmem>>, vector<2x1x128xf32>,
    } else {
    }
    return
  }
  func.func @transform_0(%arg0: i32, %arg1: i32) -> (i32, i32) {
    %c0_i32 = arith.constant 0 : i32
    %c0_i32_0 = arith.constant 0 : i32
    %c0_i32_1 = arith.constant 0 : i32
    return %c0_i32, %c0_i32_0 : i32, i32
  }
  func.func @transform_1(%arg0: i32, %arg1: i32) -> (i32, i32, i32) {
    %c0_i32 = arith.constant 0 : i32
    %c0_i32_0 = arith.constant 0 : i32
    %c0_i32_1 = arith.constant 0 : i32
    return %arg0, %c0_i32, %c0_i32_0 : i32, i32, i32
  }
  func.func @transform_2(%arg0: i32, %arg1: i32) -> (i32, i32, i32) {
    %c0_i32 = arith.constant 0 : i32
    %c0_i32_0 = arith.constant 0 : i32
    %c0_i32_1 = arith.constant 0 : i32
    return %arg0, %c0_i32, %c0_i32_0 : i32, i32, i32
  }
  func.func @transform_3(%arg0: i32, %arg1: i32) -> (i32, i32, i32) {
    %c0_i32 = arith.constant 0 : i32
    %c0_i32_0 = arith.constant 0 : i32
    %c0_i32_1 = arith.constant 0 : i32
    return %arg1, %c0_i32, %c0_i32_0 : i32, i32, i32
  }
  func.func @transform_4(%arg0: i32, %arg1: i32) -> (i32, i32, i32) {
    %c0_i32 = arith.constant 0 : i32
    %c0_i32_0 = arith.constant 0 : i32
    %c0_i32_1 = arith.constant 0 : i32
    return %arg1, %c0_i32, %c0_i32_0 : i32, i32, i32
  }
  func.func @transform_5(%arg0: i32, %arg1: i32) -> (i32, i32, i32) {
    %c0_i32 = arith.constant 0 : i32
    %c0_i32_0 = arith.constant 0 : i32
    %c0_i32_1 = arith.constant 0 : i32
    return %arg1, %c0_i32, %c0_i32_0 : i32, i32, i32
  }
  func.func @transform_6(%arg0: i32, %arg1: i32) -> (i32, i32, i32) {
    %c0_i32 = arith.constant 0 : i32
    %c0_i32_0 = arith.constant 0 : i32
    %c0_i32_1 = arith.constant 0 : i32
    return %arg1, %c0_i32, %c0_i32_0 : i32, i32, i32
  }
  func.func @transform_7(%arg0: i32, %arg1: i32) -> (i32, i32, i32) {
    %c0_i32 = arith.constant 0 : i32
    %c0_i32_0 = arith.constant 0 : i32
    %c0_i32_1 = arith.constant 0 : i32
    return %arg1, %c0_i32, %c0_i32_0 : i32, i32, i32
  }
  func.func @transform_8(%arg0: i32, %arg1: i32) -> (i32, i32, i32) {
    %c0_i32 = arith.constant 0 : i32
    %c0_i32_0 = arith.constant 0 : i32
    %c0_i32_1 = arith.constant 0 : i32
    return %arg1, %c0_i32, %c0_i32_0 : i32, i32, i32
  }
  func.func @transform_9(%arg0: i32, %arg1: i32) -> (i32, i32, i32) {
    %c0_i32 = arith.constant 0 : i32
    %c0_i32_0 = arith.constant 0 : i32
    %c0_i32_1 = arith.constant 0 : i32
    return %arg1, %c0_i32, %c0_i32_0 : i32, i32, i32
  }
  func.func @transform_10(%arg0: i32, %arg1: i32) -> (i32, i32, i32) {
    %c0_i32 = arith.constant 0 : i32
    %c0_i32_0 = arith.constant 0 : i32
    %c0_i32_1 = arith.constant 0 : i32
    return %arg1, %c0_i32, %c0_i32_0 : i32, i32, i32
  }
  func.func @transform_11(%arg0: i32, %arg1: i32) -> (i32, i32, i32) {
    %c0_i32 = arith.constant 0 : i32
    %c0_i32_0 = arith.constant 0 : i32
    %c0_i32_1 = arith.constant 0 : i32
    return %arg1, %c0_i32, %c0_i32_0 : i32, i32, i32
  }
  func.func @transform_12(%arg0: i32, %arg1: i32) -> (i32, i32, i32) {
    %c0_i32 = arith.constant 0 : i32
    %c0_i32_0 = arith.constant 0 : i32
    %c0_i32_1 = arith.constant 0 : i32
    return %arg1, %c0_i32, %c0_i32_0 : i32, i32, i32
  }
  func.func @transform_13(%arg0: i32, %arg1: i32) -> (i32, i32, i32) {
    %c0_i32 = arith.constant 0 : i32
    %c0_i32_0 = arith.constant 0 : i32
    %c0_i32_1 = arith.constant 0 : i32
    return %arg1, %c0_i32, %c0_i32_0 : i32, i32, i32
  }
  func.func @transform_14(%arg0: i32, %arg1: i32) -> (i32, i32, i32) {
    %c0_i32 = arith.constant 0 : i32
    %c0_i32_0 = arith.constant 0 : i32
    %c0_i32_1 = arith.constant 0 : i32
    return %arg1, %c0_i32, %c0_i32_0 : i32, i32, i32
  }
  func.func @transform_15(%arg0: i32, %arg1: i32) -> (i32, i32) {
    %c0_i32 = arith.constant 0 : i32
    %c0_i32_0 = arith.constant 0 : i32
    %c0_i32_1 = arith.constant 0 : i32
    return %c0_i32, %c0_i32_0 : i32, i32
  }
  func.func @transform_16(%arg0: i32, %arg1: i32) -> (i32, i32) {
    %c0_i32 = arith.constant 0 : i32
    %c0_i32_0 = arith.constant 0 : i32
    %c0_i32_1 = arith.constant 0 : i32
    return %c0_i32, %c0_i32_0 : i32, i32
  }
  func.func @transform_17(%arg0: i32, %arg1: i32) -> (i32, i32, i32) {
    %c0_i32 = arith.constant 0 : i32
    %c0_i32_0 = arith.constant 0 : i32
    %c0_i32_1 = arith.constant 0 : i32
    return %arg0, %c0_i32, %c0_i32_0 : i32, i32, i32
  }
}

</mosaic_0001>

<bundles_post_ra>
// kernel: tpu_custom_call.1
= control target key start
LH: loop header
LB: loop body
LE: loop exit
PB: predicated region body
PF: predicated region fallthrough
CT: control target
= control target key end

     0   :  { %s4383_s0 = inlined_call_operand.hbm [shape: f32[8,128], index: 0, kind: input, shape index: {}]   ;;  %s4384_s1 = inlined_call_operand.hbm [shape: f32[4,8,128], index: 1, kind: input, shape index: {}]   ;;  %s4385_s2 = inlined_call_operand.vmem [shape: f32[4,1,8], index: 2, kind: input, shape index: {}]   ;;  %s4386_s3 = inlined_call_operand.hbm [shape: bf16[2,128,384], index: 3, kind: input, shape index: {}]   ;;  %s4387_s4 = inlined_call_operand.vmem [shape: f32[2,1,384], index: 4, kind: input, shape index: {}]   ;;  %s4388_s5 = inlined_call_operand.hbm [shape: bf16[2,128,128], index: 5, kind: input, shape index: {}]   ;;  %s4389_s6 = inlined_call_operand.vmem [shape: f32[2,1,128], index: 6, kind: input, shape index: {}]   ;;  %s4390_s7 = inlined_call_operand.hbm [shape: bf16[2,128,256], index: 7, kind: input, shape index: {}]   ;;  %s4391_s8 = inlined_call_operand.vmem [shape: f32[2,1,256], index: 8, kind: input, shape index: {}]   ;;  %s4392_s9 = inlined_call_operand.hbm [shape: bf16[2,256,128], index: 9, kind: input, shape index: {}]   ;;  %s4393_s10 = inlined_call_operand.vmem [shape: f32[2,1,128], index: 10, kind: input, shape index: {}]   ;;  %s4394_s11 = inlined_call_operand.vmem [shape: f32[2,1,128], index: 11, kind: input, shape index: {}]   ;;  %s4395_s12 = inlined_call_operand.vmem [shape: f32[2,1,128], index: 12, kind: input, shape index: {}]   ;;  %s4396_s13 = inlined_call_operand.vmem [shape: f32[2,1,128], index: 13, kind: input, shape index: {}]   ;;  %s4397_s14 = inlined_call_operand.vmem [shape: f32[2,1,128], index: 14, kind: input, shape index: {}]   ;;  %s4398_s15 = inlined_call_operand.vmem [shape: f32[1,128], index: 15, kind: input, shape index: {}]   ;;  %s4399_s16 = inlined_call_operand.vmem [shape: f32[1,128], index: 16, kind: input, shape index: {}]   ;;  %s4400_s17 = inlined_call_operand.hbm [shape: f32[4,1,128], index: 17, kind: output, shape index: {}]  }
   0x1   :  { %4440 = sst [smem:[#allocation39_spill]] %s4383_s0 }
   0x2   :  { %4441 = sst [smem:[#allocation40_spill]] %s4384_s1 }
   0x3   :  { %4442 = sst [smem:[#allocation41_spill]] %s4385_s2 }
   0x4   :  { %4443 = sst [smem:[#allocation42_spill]] %s4386_s3 }
   0x5   :  { %4444 = sst [smem:[#allocation43_spill]] %s4387_s4 }
   0x6   :  { %4445 = sst [smem:[#allocation44_spill]] %s4388_s5 }
   0x7   :  { %4446 = sst [smem:[#allocation45_spill]] %s4389_s6 }
   0x8   :  { %4447 = sst [smem:[#allocation46_spill]] %s4390_s7 }
   0x9   :  { %4448 = sst [smem:[#allocation47_spill]] %s4391_s8 }
   0xa   :  { %4449 = sst [smem:[#allocation48_spill]] %s4392_s9 }
   0xb   :  { %4450 = sst [smem:[#allocation49_spill]] %s4393_s10 }
   0xc   :  { %4451 = sst [smem:[#allocation50_spill]] %s4394_s11 }
   0xd   :  { %4452 = sst [smem:[#allocation51_spill]] %s4395_s12 }
   0xe   :  { %4453 = sst [smem:[#allocation52_spill]] %s4396_s13 }
   0xf   :  { %4454 = sst [smem:[#allocation53_spill]] %s4397_s14 }
  0x10   :  { %4455 = sst [smem:[#allocation54_spill]] %s4398_s15 }
  0x11   :  { %4456 = sst [smem:[#allocation55_spill]] %s4399_s16 }
  0x12   :  { %4457 = sst [smem:[#allocation56_spill]] %s4400_s17 }
  0x13   :  { %22 = vsyncpa [#allocation4], 0 }
  0x14   :  { %23 = vsyncpa [#allocation7], 0 }
  0x15   :  { %25 = vsyncpa [#allocation7 + $0x1], 0 }
  0x16   :  { %26 = vsyncpa [#allocation10], 0 }
  0x17   :  { %28 = vsyncpa [#allocation10 + $0x1], 0 }
  0x18   :  { %29 = vsyncpa [#allocation13], 0 }
  0x19   :  { %31 = vsyncpa [#allocation13 + $0x1], 0 }
  0x1a   :  { %32 = vsyncpa [#allocation5], 0 }
  0x1b   :  { %34 = vsyncpa [#allocation5 + $0x1], 0  ;;  %s3580_s24 = smov 0   ;;  %s3582_s25 = smov 0  }
  0x1c   :  { %s3584_s26 = smov 0   ;;  %s3586_s27 = smov 0  }
  0x1d   :  { %s3588_s28 = smov 0   ;;  %s3590_s29 = smov 0  }
  0x1e   :  { %s3592_s0 = smov 0   ;;  %s3594_s30 = smov 0  }
  0x1f   :  { %s3596_s18 = smov 0   ;;  %s3598_s19 = smov 0  }
  0x20   :  { %s3600_s1 = smov 0  }
  0x21 LB: > { %4458 = sst [smem:[#allocation21_spill]] %s3433_s25  ;;  %p4405_p0 = scmp.ne.s32.totalorder %s3449_s29, %s3445_s28  ;;  %s3469_s1 = sphi %s3600_s1, %s40_s1   ;;  %s3465_s19 = sphi %s3598_s19, %s4549_s19   ;;  %s3461_s18 = sphi %s3596_s18, %s4548_s18   ;;  %s3457_s30 = sphi %s3594_s30, %s4547_s30   ;;  %s3453_s0 = sphi %s3592_s0, %s4546_s0   ;;  %s3449_s29 = sphi %s3590_s29, %s4545_s29   ;;  %s3445_s28 = sphi %s3588_s28, %s4544_s28   ;;  %s3441_s27 = sphi %s3586_s27, %s4543_s27   ;;  %s3437_s26 = sphi %s3584_s26, %s4542_s26   ;;  %s3433_s25 = sphi %s3582_s25, %s4541_s25   ;;  %s3429_s24 = sphi %s3580_s24, %s4540_s24  }
  0x22   : > { %4459 = sst [smem:[#allocation22_spill]] %s3437_s26  ;;  %p88_p1 = scmp.eq.s32.totalorder %s3469_s1, 0 }
  0x23   : > { %4460 = sst [smem:[#allocation23_spill]] %s3441_s27  ;;  %p4406_p2 = scmp.lt.s32.totalorder %s3469_s1, 4 }
  0x24   : > { %4461 = sst [smem:[#allocation24_spill]] %s3445_s28  ;;  %p89_p3 = por %p88_p1, %p4405_p0 }
  0x25   : > { %4462 = sst [smem:[#allocation25_spill]] %s3449_s29  ;;  %s4404_s22 = sand.u32 1, %s3469_s1  }
  0x26   : > { %4463 = sst [smem:[#allocation26_spill]] %s3453_s0  ;;  %s542_s23 = sand.u32 1, %s3449_s29  }
  0x27   : > { %4464 = sst [smem:[#allocation27_spill]] %s3457_s30  ;;  %s2605_s17 = sshll.u32 %s542_s23, 4 }
  0x28   : > { %4465 = sst [smem:[#allocation28_spill]] %s3461_s18  ;;  %s2724_s16 = sshll.u32 %s3465_s19, 8 }
  0x29   : > { %4466 = sst [smem:[#allocation29_spill]] %s3465_s19  ;;  %s4468_s13 = sld [smem:[#allocation40_spill]] }
  0x2a   : > { %4467 = sst [smem:[#allocation30_spill]] %s3469_s1  ;;  %s544_s21 = scalar_lea.vmem [#allocation6], %s2605_s17 }
  0x2b   : > { %s551_s20 = sshll.u32 %s544_s21, 4  ;;  %p3656_p4 = pnand %p4406_p2, %p89_p3  ;;  %s3660_s20 = int_to_ptr.vmem [resolvable:$true] %s551_s20 }
  0x2c   : > { %s3664_s23 = scalar_lea.sflag [#allocation7], %s4404_s22 }
  0x2d   : > { %p3155_p6 = pneg %p3656_p4 }
  0x2f   : > { %s3652_s12 = scalar_lea.hbm %s4468_s13, %s2724_s16  ;;  %s3158_s17 = scalar_lea.hbm %s4468_s13, 512 }
  0x30   : > { %s3153_s14 = scalar_lea.hbm %s3652_s12, 256  ;;  %p3159_p9 = scmp.lt.u32.totalorder %s3652_s12, %s4468_s13 }
  0x31   : > { %p3154_p5 = scmp.ne.s32.totalorder %s3652_s12, %s3153_s14  ;;  %p3160_p10 = scmp.lt.u32.totalorder %s3158_s17, %s3153_s14 }
  0x32   : > { %p3162_p12 = scmp.lt.u32.totalorder %s3153_s14, %s3652_s12 }
  0x33   : > { %p3156_p7 = pnand %p3155_p6, %p3154_p5  ;;  %p3161_p11 = por %p3160_p10, %p3159_p9 }
  0x35   : > { %p3157_p8 = pneg %p3156_p7  ;;  %p3163_p13 = por %p3162_p12, %p3161_p11 }
  0x37   : > { %p3164_p3 = pnand %p3163_p13, %p3157_p8 }
  0x39   : > { %3167 = shalt.err (!%p3164_p3)
}
  0x3a   : > { %s3168_s22 = scalar_lea.vmem %s3660_s20, 256  ;;  %s3471_s15 = smov [#allocation6]  }
  0x3b   : > { %p3169_p5 = scmp.ne.s32.totalorder %s3660_s20, %s3168_s22  ;;  %s3173_s16 = sshll.u32 %s3471_s15, 4  ;;  %s3174_s16 = int_to_ptr.vmem [resolvable:$false] %s3173_s16 }
  0x3c   : > { %s3175_s8 = scalar_lea.vmem %s3174_s16, 512  ;;  %p3176_p2 = scmp.lt.s32.totalorder %s3660_s20, %s3174_s16 }
  0x3d   : > { %p3171_p7 = pnand %p3169_p5, %p3155_p6  ;;  %p3177_p9 = scmp.lt.s32.totalorder %s3175_s8, %s3168_s22 }
  0x3f   : > { %p3172_p0 = pneg %p3171_p7  ;;  %p3178_p10 = por %p3177_p9, %p3176_p2 }
  0x41   : > { %p3179_p11 = pnand %p3178_p10, %p3172_p0 }
  0x43   : > { %3182 = shalt.err (!%p3179_p11)
}
  0x44   : > { %s4407_s14 = smov 128   ;;  %s4408_s17 = smov 8  }
  0x45   : > { %2911 = dma.hbm_to_vmem [thread:$0]  (!%p3656_p4), %s3652_s12, 256, %s3660_s20, %s3664_s23, %s4407_s14, %s4407_s14, %s4408_s17  }
  0x46   : > { %s49_s22 = sadd.s32 1, %s3461_s18  ;;  %s132_s21 = sadd.s32 1, %s3437_s26 }
  0x47   : > { %p50_p0 = scmp.ge.s32.totalorder %s49_s22, 2  ;;  %p139_p2 = scmp.ne.s32.totalorder %s3437_s26, %s3433_s25 }
  0x48   : > { %s3700_s15 = sand.u32 1, %s3437_s26   ;;  %s4471_s16 = sadd.s32 1, %s3465_s19 }
  0x49   : > { %s4551_s22 = smov (%p50_p0, %s49_s22), 0  ;;  %s4553_s16 = smov (!%p50_p0, %s4471_s16), %s3465_s19 }
  0x4a   : > { %4470 = sst [smem:[#allocation31_spill]] %s4551_s22  ;;  %s129_s11 = ssub.s32 %s3461_s18, %s4551_s22 }
  0x4b   : > { %p141_p4 = por %p139_p2, %p88_p1  ;;  %p54_p6 = scmp.ge.s32.totalorder %s4553_s16, 2 }
  0x4c   : > { %p130_p8 = scmp.eq.s32.totalorder %s129_s11, 0  ;;  %p4472_p12 = scmp.lt.s32.totalorder %s3469_s1, 4 }
  0x4d   : > { %s2609_s20 = sshll.u32 %s3700_s15, 6  ;;  %s4555_s16 = smov (%p54_p6, %s4553_s16), 0 }
  0x4e   : > { %p3713_p13 = pnand %p4472_p12, %p141_p4  ;;  %4474 = sst [smem:[#allocation32_spill]] %s4555_s16 }
  0x4f   : > { %s3721_s8 = scalar_select %p130_p8, %s3437_s26, %s132_s21  }
  0x50   : > { %s4473_s12 = scalar_select %p3713_p13, 1, 0 }
  0x51   : > { %4475 = sst [smem:[#allocation33_spill]] %s3721_s8  ;;  %s77_s14 = ssub.s32 %s3465_s19, %s4555_s16 }
  0x52   : > { %p78_p3 = scmp.eq.s32.totalorder %s77_s14, 0  ;;  %s2725_s17 = sshll.u32 %s3461_s18, 10 }
  0x53   : > { %s601_s13 = scalar_lea.vmem [#allocation9], %s2609_s20  ;;  %s4476_s4 = sadd.s32 1, %s3449_s29 }
  0x54   : > { %s608_s22 = sshll.u32 %s601_s13, 4  ;;  %s4478_s5 = sld [smem:[#allocation44_spill]]  ;;  %s3736_s22 = int_to_ptr.vmem [resolvable:$true] %s608_s22 }
  0x55   : > { %s3729_s10 = scalar_select %p78_p3, %s3449_s29, %s4476_s4  }
  0x56   : > { %s4479_s21 = sand.u32 1, %s3469_s1   ;;  %p3746_p5 = pneg %p3713_p13 }
  0x57   : > { %4477 = sst [smem:[#allocation34_spill]] %s3729_s10  ;;  %s3740_s16 = scalar_lea.sflag [#allocation10], %s4479_s21 }
  0x58   : > { %s4480_s4 = scalar_select %p3746_p5, 1, 0 }
  0x5a   : > { %s3734_s2 = scalar_lea.hbm %s4478_s5, %s2725_s17  ;;  %s3188_s17 = scalar_lea.hbm %s4478_s5, 2048 }
  0x5b   : > { %s3183_s14 = scalar_lea.hbm %s3734_s2, 1024  ;;  %p3189_p10 = scmp.lt.u32.totalorder %s3734_s2, %s4478_s5 }
  0x5c   : > { %p3184_p1 = scmp.ne.s32.totalorder %s3734_s2, %s3183_s14  ;;  %p3190_p11 = scmp.lt.u32.totalorder %s3188_s17, %s3183_s14 }
  0x5d   : > { %p3192_p2 = scmp.lt.u32.totalorder %s3183_s14, %s3734_s2 }
  0x5e   : > { %p3186_p7 = pnand %p3746_p5, %p3184_p1  ;;  %p3191_p0 = por %p3190_p11, %p3189_p10 }
  0x60   : > { %p3187_p9 = pneg %p3186_p7  ;;  %p3193_p4 = por %p3192_p2, %p3191_p0 }
  0x62   : > { %p3194_p6 = pnand %p3193_p4, %p3187_p9 }
  0x64   : > { %3197 = shalt.err (!%p3194_p6)
}
  0x65   : > { %s3198_s21 = scalar_lea.vmem %s3736_s22, 1024  ;;  %s3474_s6 = smov [#allocation9]  }
  0x66   : > { %p3199_p8 = scmp.ne.s32.totalorder %s3736_s22, %s3198_s21  ;;  %s3203_s13 = sshll.u32 %s3474_s6, 4  ;;  %s3204_s13 = int_to_ptr.vmem [resolvable:$false] %s3203_s13 }
  0x67   : > { %s3205_s20 = scalar_lea.vmem %s3204_s13, 2048  ;;  %p3206_p1 = scmp.lt.s32.totalorder %s3736_s22, %s3204_s13 }
  0x68   : > { %p3201_p12 = pnand %p3199_p8, %p3746_p5  ;;  %p3207_p7 = scmp.lt.s32.totalorder %s3205_s20, %s3198_s21 }
  0x6a   : > { %p3202_p3 = pneg %p3201_p12  ;;  %p3208_p10 = por %p3207_p7, %p3206_p1 }
  0x6c   : > { %p3209_p11 = pnand %p3208_p10, %p3202_p3 }
  0x6e   : > { %3212 = shalt.err (!%p3209_p11)
}
  0x6f   : > { %s4413_s14 = smov 64   ;;  %s4414_s17 = smov 4  }
  0x70   : > { %2917 = dma.hbm_to_vmem [thread:$0]  (!%p3713_p13), %s3734_s2, 1024, %s3736_s22, %s3740_s16, %s4413_s14, %s4413_s14, %s4414_s17  }
  0x71   : > { %s3774_s11 = sadd.s32 4294967295, %s3469_s1   ;;  %s2601_s21 = sadd.s32 4294967294, %s3469_s1  }
  0x72   : > { %p93_p9 = scmp.ne.s32.totalorder %s3445_s28, %s3441_s27  ;;  %p4425_p0 = scmp.eq.s32.totalorder %s3774_s11, 0 }
  0x73   : > { %p145_p2 = scmp.ne.s32.totalorder %s3433_s25, %s3429_s24  ;;  %p497_p4 = scmp.eq.s32.totalorder %s3774_s11, 3 }
  0x74   : > { %p3785_p6 = por %p4425_p0, %p93_p9  ;;  %p503_p8 = scmp.eq.s32.totalorder %s2601_s21, 3 }
  0x75   : > { %p3791_p12 = por %p145_p2, %p4425_p0  ;;  %p4483_p3 = scmp.ne.s32.totalorder %s3449_s29, %s3445_s28 }
  0x76   : > { %s4481_s6 = scalar_select %p3785_p6, 1, 0 }
  0x77   : > { %s4482_s2 = scalar_select %p3791_p12, 1, 0 }
  0x78   : > { %p3798_p1 = por %p497_p4, %p4483_p3  ;;  %p3802_p7 = por %p503_p8, %p93_p9 }
  0x79   : > { %p2602_p10 = scmp.ge.s32.totalorder %s3469_s1, 1  ;;  %p510_p11 = scmp.lt.s32.totalorder %s3469_s1, 5 }
  0x7a   : > { %s4484_s22 = scalar_select %p3798_p1, 1, 0 }
  0x7b   : > { %s4486_s24 = scalar_select %p3802_p7, 1, 0 }
  0x7c   : > { %4485 = sst [smem:[#allocation35_spill]] %s4484_s22  ;;  %s2884_s13 = smul.u32 192, %s3700_s15 }
  0x7d   : > { %4487 = sst [smem:[#allocation36_spill]] %s4486_s24  ;;  %p3809_p6 = pnand %p2602_p10, %p510_p11 }
  0x7e   : > { %s3477_s21 = smov [#allocation3]   ;;  %s2885_s17 = smul.u32 3072, %s3461_s18 }
  0x7f   : > { %s4488_s20 = scalar_select %p3809_p6, 1, 0 }
  0x80   : > { %s523_s14 = sshll.u32 %s3477_s21, 4  ;;  %p2904_p2 = pneg %p3809_p6  ;;  %s524_s14 = int_to_ptr.vmem [resolvable:$true] %s523_s14 }
  0x81   : > { %s573_s5 = scalar_lea.vmem [#allocation8], %s2884_s13  ;;  %s4490_s3 = sld [smem:[#allocation42_spill]] }
  0x82   : > { %s580_s19 = sshll.u32 %s573_s5, 4  ;;  %p3818_p9 = pnand %p2904_p2, %p4425_p0  ;;  %s3827_s19 = int_to_ptr.vmem [resolvable:$true] %s580_s19 }
  0x83   : > { %s2612_s21 = sshll.u32 %s3700_s15, 7  ;;  %s4491_s1 = sld [smem:[#allocation39_spill]] }
  0x84   : > { %p3215_p8 = pneg %p3818_p9 }
  0x87   : > { %s3825_s26 = scalar_lea.hbm %s4490_s3, %s2885_s17 }
  0x89   : > { %s4492_s22 = smov %s4491_s1  ;;  %s3213_s0 = scalar_lea.hbm %s4491_s1, 128 }
  0x8a   : > { %p3214_p4 = scmp.ne.s32.totalorder %s4492_s22, %s3213_s0  ;;  %p3220_p11 = scmp.lt.u32.totalorder %s3213_s0, %s4492_s22 }
  0x8c   : > { %p3216_p3 = pnand %p3215_p8, %p3214_p4 }
  0x8e   : > { %p3217_p10 = pneg %p3216_p3 }
  0x90   : > { %p3222_p2 = pnand %p3220_p11, %p3217_p10 }
  0x92   : > { %3225 = shalt.err (!%p3222_p2)
}
  0x93   : > { %s3226_s8 = scalar_lea.vmem %s524_s14, 128  ;;  %p3234_p12 = scmp.lt.s32.totalorder %s524_s14, %s524_s14 }
  0x94   : > { %p3227_p0 = scmp.ne.s32.totalorder %s524_s14, %s3226_s8  ;;  %p3235_p6 = scmp.lt.s32.totalorder %s3226_s8, %s3226_s8 }
  0x96   : > { %p3229_p7 = pnand %p3227_p0, %p3215_p8  ;;  %p3236_p13 = por %p3235_p6, %p3234_p12 }
  0x98   : > { %p3230_p1 = pneg %p3229_p7 }
  0x9a   : > { %p3237_p5 = pnand %p3236_p13, %p3230_p1 }
  0x9c   : > { %3240 = shalt.err (!%p3237_p5)
}
  0x9d   : > { %2907 = dma.hbm_to_vmem [thread:$0]  (!%p3818_p9), %s4492_s22, 128, %s524_s14, [#allocation4]  }
  0x9e   : > { %s3241_s0 = scalar_lea.hbm %s3825_s26, 3072  ;;  %p4493_p0 = scmp.ne.s32.totalorder %s4480_s4, 0 }
  0x9f   : > { %p3242_p4 = scmp.ne.s32.totalorder %s3825_s26, %s3241_s0  ;;  %s3246_s24 = scalar_lea.hbm %s4490_s3, 6144 }
  0xa0   : > { %p3247_p13 = scmp.lt.u32.totalorder %s3825_s26, %s4490_s3  ;;  %p3248_p5 = scmp.lt.u32.totalorder %s3246_s24, %s3241_s0 }
  0xa1   : > { %p3244_p7 = pnand %p3242_p4, %p4493_p0  ;;  %p3250_p12 = scmp.lt.u32.totalorder %s3241_s0, %s3825_s26 }
  0xa2   : > { %p3249_p6 = por %p3248_p5, %p3247_p13 }
  0xa3   : > { %p3245_p8 = pneg %p3244_p7 }
  0xa4   : > { %p3251_p1 = por %p3250_p12, %p3249_p6 }
  0xa6   : > { %p3252_p3 = pnand %p3251_p1, %p3245_p8 }
  0xa8   : > { %3255 = shalt.err (!%p3252_p3)
}
  0xa9   : > { %s3256_s14 = scalar_lea.vmem %s3827_s19, 3072  ;;  %s3478_s5 = smov [#allocation8]  }
  0xaa   : > { %p3257_p9 = scmp.ne.s32.totalorder %s3827_s19, %s3256_s14  ;;  %s3261_s29 = sshll.u32 %s3478_s5, 4  ;;  %s3262_s29 = int_to_ptr.vmem [resolvable:$false] %s3261_s29 }
  0xab   : > { %s3263_s8 = scalar_lea.vmem %s3262_s29, 6144  ;;  %p3264_p2 = scmp.lt.s32.totalorder %s3827_s19, %s3262_s29 }
  0xac   : > { %p3259_p10 = pnand %p3257_p9, %p4493_p0  ;;  %p3265_p4 = scmp.lt.s32.totalorder %s3263_s8, %s3256_s14 }
  0xae   : > { %p3260_p11 = pneg %p3259_p10  ;;  %p3266_p7 = por %p3265_p4, %p3264_p2 }
  0xb0   : > { %p3267_p13 = pnand %p3266_p7, %p3260_p11 }
  0xb2   : > { %3270 = shalt.err (!%p3267_p13)
}
  0xb3   : > { %s3479_s27 = smov 192   ;;  %s3480_s1 = smov 12  }
  0xb4   : > { %p4494_p8 = scmp.ne.s32.totalorder %s4473_s12, 0  ;;  %s2726_s0 = sshll.u32 %s3461_s18, 11 }
  0xb5   : > { %s4495_s7 = sld [smem:[#allocation46_spill]]  ;;  %s628_s13 = scalar_lea.vmem [#allocation11], %s2612_s21 }
  0xb6   : > { %2914 = dma.hbm_to_vmem [thread:$0]  (!%p4494_p8), %s3825_s26, 3072, %s3827_s19, %s3664_s23, %s3479_s27, %s3479_s27, %s3480_s1  }
  0xb7   : > { %s635_s10 = sshll.u32 %s628_s13, 4  ;;  %s3878_s10 = int_to_ptr.vmem [resolvable:$true] %s635_s10 }
  0xbb   : > { %s3874_s24 = scalar_lea.hbm %s4495_s7, %s2726_s0  ;;  %s3276_s23 = scalar_lea.hbm %s4495_s7, 4096 }
  0xbc   : > { %s3271_s14 = scalar_lea.hbm %s3874_s24, 2048  ;;  %p3277_p1 = scmp.lt.u32.totalorder %s3874_s24, %s4495_s7 }
  0xbd   : > { %p3272_p5 = scmp.ne.s32.totalorder %s3874_s24, %s3271_s14  ;;  %p3278_p3 = scmp.lt.u32.totalorder %s3276_s23, %s3271_s14 }
  0xbe   : > { %p3280_p10 = scmp.lt.u32.totalorder %s3271_s14, %s3874_s24 }
  0xbf   : > { %p3274_p6 = pnand %p3272_p5, %p4493_p0  ;;  %p3279_p9 = por %p3278_p3, %p3277_p1 }
  0xc1   : > { %p3275_p12 = pneg %p3274_p6  ;;  %p3281_p11 = por %p3280_p10, %p3279_p9 }
  0xc3   : > { %p3282_p2 = pnand %p3281_p11, %p3275_p12 }
  0xc5   : > { %3285 = shalt.err (!%p3282_p2)
}
  0xc6   : > { %s3286_s8 = scalar_lea.vmem %s3878_s10, 2048  ;;  %s3481_s27 = smov [#allocation11]  }
  0xc7   : > { %p3287_p4 = scmp.ne.s32.totalorder %s3878_s10, %s3286_s8  ;;  %s3291_s1 = sshll.u32 %s3481_s27, 4  ;;  %s3292_s1 = int_to_ptr.vmem [resolvable:$false] %s3291_s1 }
  0xc8   : > { %s3293_s30 = scalar_lea.vmem %s3292_s1, 4096  ;;  %p3294_p5 = scmp.lt.s32.totalorder %s3878_s10, %s3292_s1 }
  0xc9   : > { %p3289_p7 = pnand %p3287_p4, %p4493_p0  ;;  %p3295_p6 = scmp.lt.s32.totalorder %s3293_s30, %s3286_s8 }
  0xcb   : > { %p3290_p13 = pneg %p3289_p7  ;;  %p3296_p1 = por %p3295_p6, %p3294_p5 }
  0xcd   : > { %p3297_p3 = pnand %p3296_p1, %p3290_p13 }
  0xcf   : > { %3300 = shalt.err (!%p3297_p3)
}
  0xd0   : > { %s4496_s17 = smov 8   ;;  %s4497_s13 = smov 128  }
  0xd1   : > { %2920 = dma.hbm_to_vmem [thread:$0]  (!%p4494_p8), %s3874_s24, 2048, %s3878_s10, %s3740_s16, %s4497_s13, %s4497_s13, %s4496_s17  }
  0xd2   : > { %s4498_s9 = sld [smem:[#allocation48_spill]]  ;;  %s656_s23 = scalar_lea.vmem [#allocation12], %s2612_s21 }
  0xd3   : > { %s663_s5 = sshll.u32 %s656_s23, 4  ;;  %s653_s29 = scalar_lea.sflag [#allocation13], %s3700_s15  ;;  %s3914_s5 = int_to_ptr.vmem [resolvable:$true] %s663_s5 }
  0xd8   : > { %s3910_s19 = scalar_lea.hbm %s4498_s9, %s2726_s0  ;;  %s3306_s0 = scalar_lea.hbm %s4498_s9, 4096 }
  0xd9   : > { %s3301_s8 = scalar_lea.hbm %s3910_s19, 2048  ;;  %p3307_p11 = scmp.lt.u32.totalorder %s3910_s19, %s4498_s9 }
  0xda   : > { %p3302_p12 = scmp.ne.s32.totalorder %s3910_s19, %s3301_s8  ;;  %p3308_p2 = scmp.lt.u32.totalorder %s3306_s0, %s3301_s8 }
  0xdb   : > { %p3310_p7 = scmp.lt.u32.totalorder %s3301_s8, %s3910_s19 }
  0xdc   : > { %p3304_p9 = pnand %p3302_p12, %p4493_p0  ;;  %p3309_p4 = por %p3308_p2, %p3307_p11 }
  0xde   : > { %p3305_p10 = pneg %p3304_p9  ;;  %p3311_p13 = por %p3310_p7, %p3309_p4 }
  0xe0   : > { %p3312_p5 = pnand %p3311_p13, %p3305_p10 }
  0xe2   : > { %3315 = shalt.err (!%p3312_p5)
}
  0xe3   : > { %s3316_s21 = scalar_lea.vmem %s3914_s5, 2048  ;;  %s3482_s1 = smov [#allocation12]  }
  0xe4   : > { %p3317_p6 = scmp.ne.s32.totalorder %s3914_s5, %s3316_s21  ;;  %s3321_s30 = sshll.u32 %s3482_s1, 4  ;;  %s3322_s30 = int_to_ptr.vmem [resolvable:$false] %s3321_s30 }
  0xe5   : > { %s3323_s17 = scalar_lea.vmem %s3322_s30, 4096  ;;  %p3324_p12 = scmp.lt.s32.totalorder %s3914_s5, %s3322_s30 }
  0xe6   : > { %p3319_p1 = pnand %p3317_p6, %p4493_p0  ;;  %p3325_p9 = scmp.lt.s32.totalorder %s3323_s17, %s3316_s21 }
  0xe8   : > { %p3320_p3 = pneg %p3319_p1  ;;  %p3326_p11 = por %p3325_p9, %p3324_p12 }
  0xea   : > { %p3327_p2 = pnand %p3326_p11, %p3320_p3 }
  0xec   : > { %3330 = shalt.err (!%p3327_p2)
}
  0xed   : > { %s4499_s13 = smov 4   ;;  %s4500_s14 = smov 64  }
  0xee   : > { %2923 = dma.hbm_to_vmem [thread:$0]  (!%p4494_p8), %s3910_s19, 2048, %s3914_s5, %s653_s29, %s4500_s14, %s4500_s14, %s4499_s13  }
  0xef   : > { %p4501_p0 = scmp.ne.s32.totalorder %s4488_s20, 0 }
  0xf1   : > { %705 = sbr.rel (%p4501_p0) target bundleno = 3501 (0xdad), region = 88 }
  0xf8   : > { %p4502_p10 = scmp.eq.s32.totalorder %s3774_s11, 0 }
  0xfa   : > { %3404 = dma.done.wait (%p4502_p10), [#allocation4], 128   ;;  %p4503_p4 = pmov %p4502_p10 }
  0xfb   : > { %s711_s12 = sand.u32 1, %s3774_s11   ;;  %s3951_s4 = sand.u32 1, %s3445_s28  }
  0xfc   : > { %3406 = vsyncadd (%p4503_p4), [#allocation4], 4294967168  ;;  %4504 = sst [smem:[#allocation37_spill]] %s3951_s4  ;;  %s2620_s15 = sshll.u32 %s3951_s4, 4 }
  0xfd   : > { %s712_s26 = scalar_lea.sflag [#allocation7], %s711_s12  ;;  %s3954_s23 = scalar_lea.vmem [#allocation6], %s2620_s15 }
  0xfe   : > { %p4505_p8 = scmp.ne.s32.totalorder %s4481_s6, 0 }
 0x100   : > { %3408 = dma.done.wait (%p4505_p8), %s712_s26, 256  }
 0x101   : > { %3410 = vsyncadd (%p4505_p8), %s712_s26, 4294967040  ;;  %s722_s20 = sand.u32 1, %s3433_s25   ;;  %p4506_p7 = scmp.ne.s32.totalorder %s4482_s2, 0 }
 0x102   : > { %s2886_s19 = smul.u32 192, %s722_s20 }
 0x104   : > { %s3961_s5 = scalar_lea.vmem [#allocation8], %s2886_s19 }
 0x105   : > { %3412 = dma.done.wait (%p4506_p7), %s712_s26, 3072  }
 0x106   : > { %3414 = vsyncadd (%p4506_p7), %s712_s26, 4294964224  ;;  %s2621_s11 = sshll.u32 %s722_s20, 6  ;;  %s730_s29 = scalar_lea.sflag [#allocation10], %s711_s12 }
 0x107   : > { %s3967_s8 = scalar_lea.vmem [#allocation9], %s2621_s11 }
 0x108   : > { %3416 = dma.done.wait (%p4506_p7), %s730_s29, 3072  }
 0x109   : > { %3418 = vsyncadd (%p4506_p7), %s730_s29, 4294964224  ;;  %s2622_s6 = sshll.u32 %s722_s20, 7  ;;  %s748_s24 = scalar_lea.sflag [#allocation13], %s722_s20 }
 0x10a   : > { %s3973_s16 = scalar_lea.vmem [#allocation11], %s2622_s6  ;;  %s3975_s0 = scalar_lea.vmem [#allocation12], %s2622_s6 }
 0x10b   : > { %4507 = sst [smem:[#allocation38_spill]] %s3975_s0 }
 0x10c   : > { %3420 = dma.done.wait (%p4506_p7), %s748_s24, 2048  }
 0x10d   : > { %3422 = vsyncadd (%p4506_p7), %s748_s24, 4294965248  ;;  %s4508_s10 = sld [smem:[#allocation27_spill]]  ;;  %s4509_s27 = sld [smem:[#allocation26_spill]] }
 0x10e   : > { %s2624_s21 = sshll.u32 %s3951_s4, 1  ;;  %s4510_s14 = sld [smem:[#allocation41_spill]] }
 0x10f   : > { %s4513_s3 = sld [smem:[#allocation43_spill]]  ;;  %s4514_s18 = sld [smem:[#allocation47_spill]] }
 0x110   : > { %s4515_s25 = sld [smem:[#allocation50_spill]]  ;;  %s4516_s19 = sld [smem:[#allocation51_spill]] }
 0x111   : > { %s4517_s24 = sld [smem:[#allocation52_spill]]  ;;  %s4028_s0 = scalar_lea.vmem [#allocation14], %s2624_s21 }
 0x113   : > { %s2625_s1 = sshll.u32 %s4508_s10, 1  ;;  %p858_p5 = scmp.lt.s32.totalorder %s4509_s27, 1 }
 0x114   : > { %p854_p13 = scmp.lt.s32.totalorder %s2625_s1, 3  ;;  %p2627_p6 = scmp.ne.s32.totalorder %s4509_s27, 0 }
 0x115   : > { %s3985_s30 = scalar_select %p858_p5, %s4509_s27, 1 }
 0x116   : > { %s4557_s1 = smov (!%p854_p13, %s2625_s1), 3  ;;  %v890_v0 = vld [vmem:[%s3954_s23] sm:$0xff] (!%p2627_p6)  ;;  %v892_v1 = vld [vmem:[#allocation3] sm:$0xff] (!%p2627_p6) }
 0x117   : > { %s3990_s2 = scalar_lea.vmem %s4510_s14, %s4557_s1  ;;  %s2887_s12 = smul.u32 3, %s3985_s30  ;;  %v891_v2 = vld [vmem:[%s3954_s23 + $0x8] sm:$0xff] (!%p2627_p6)  ;;  %v893_v3 = vadd.f32 (!%p2627_p6), %v892_v1, %v890_v0 }
 0x118   : > { %s2626_s11 = sshll.u32 %s3985_s30, 1  ;;  %s874_s15 = scalar_lea.vmem %s4515_s25, %s3985_s30  ;;  %v894_v4 = vadd.f32 (!%p2627_p6), %v892_v1, %v891_v2 }
 0x119   : > { %s4005_s7 = scalar_lea.vmem %s4513_s3, %s2887_s12  ;;  %s4010_s1 = scalar_lea.vmem %s4514_s18, %s2626_s11  ;;  %895 = vst [vmem:[#allocation2] sm:$0xff] (!%p2627_p6), %v893_v3 }
 0x11a   : > { %s877_s4 = scalar_lea.vmem %s4516_s19, %s3985_s30  ;;  %s880_s10 = scalar_lea.vmem %s4517_s24, %s3985_s30  ;;  %896 = vst [vmem:[#allocation2 + $0x8] sm:$0xff] (!%p2627_p6), %v894_v4 }
 0x11b   : > { %s4518_s12 = sld [smem:[#allocation53_spill]]  ;;  %889 = sbr.rel (%p2627_p6) target bundleno = 290 (0x122), region = 116 }
 0x121   : > { %s883_s13 = scalar_lea.vmem %s4518_s12, %s3985_s30 }
 0x122 PF: > { %v4033_v5 = vld [vmem:[#allocation2] sm:$0xff]  ;;  %v4035_v6 = vld [vmem:[#allocation2 + $0x8] sm:$0xff]  ;;  %v3483_v18 = vmov 0.0   ;;  %v3039_v20 = vld [vmem:[%s3961_s5 + $0x18] ss:$12 sps:$4 sm:$0xff]   ;;  %v3484_v32 = vmov 0   ;;  %v991_v4 = vlaneseq }
 0x123   : > { %903 = vadd.xlane.f32.xlu0 %v4033_v5  ;;  %v3033_v15 = vld [vmem:[%s3961_s5 + $0x4] ss:$12 sps:$4 sm:$0xff]   ;;  %v3035_v16 = vld [vmem:[%s3961_s5] ss:$12 sps:$4 sm:$0xff]   ;;  %v3036_v17 = vld [vmem:[%s3961_s5 + $0x8] ss:$12 sps:$4 sm:$0xff]   ;;  %2792 = vmatprep.subr.bf16.mxu1 %v3483_v18 }
 0x124   : > { %1134 = vmatprep.subr.bf16.mxu0 %v3033_v15  ;;  %2793 = vmatpush3.bf16.msra.mxu1 %v3036_v17  ;;  %v3037_v19 = vld [vmem:[%s3961_s5 + $0x1c] ss:$12 sps:$4 sm:$0xff]   ;;  %v3040_v21 = vld [vmem:[%s3961_s5 + $0x20] ss:$12 sps:$4 sm:$0xff]   ;;  %v3044_v24 = vld [vmem:[%s3961_s5 + $0x38] ss:$12 sps:$4 sm:$0xff]  }
 0x125   : > { %1135 = vmatpush1.bf16.msra.mxu0 %v3035_v16  ;;  %2794 = vmatprep.subr.bf16.mxu1 %v3483_v18  ;;  %v3041_v22 = vld [vmem:[%s3961_s5 + $0x34] ss:$12 sps:$4 sm:$0xff]   ;;  %v3043_v23 = vld [vmem:[%s3961_s5 + $0x30] ss:$12 sps:$4 sm:$0xff]   ;;  %v3045_v25 = vld [vmem:[%s3961_s5 + $0x4c] ss:$12 sps:$4 sm:$0xff]  }
 0x126   : > { %1136 = vmatprep.subr.bf16.mxu0 %v3037_v19  ;;  %v3047_v26 = vld [vmem:[%s3961_s5 + $0x48] ss:$12 sps:$4 sm:$0xff]   ;;  %v3048_v27 = vld [vmem:[%s3961_s5 + $0x50] ss:$12 sps:$4 sm:$0xff]   ;;  %v3051_v29 = vld [vmem:[%s3961_s5 + $0x60] ss:$12 sps:$4 sm:$0xff]   ;;  %1166 = vmatprep.mubr.bf16.mxu0 %v3484_v32 }
 0x127   : > { %905 = vadd.xlane.f32.xlu0 %v4035_v6  ;;  %v3049_v28 = vld [vmem:[%s3961_s5 + $0x64] ss:$12 sps:$4 sm:$0xff]   ;;  %v3052_v30 = vld [vmem:[%s3961_s5 + $0x68] ss:$12 sps:$4 sm:$0xff]   ;;  %vm3485_vm0 = vmmov 0   ;;  %vm1247_vm5 = vcmask 523264  }
 0x128   : > { %2795 = vmatpush3.bf16.msra.mxu1 %v3040_v21  ;;  %v3053_v31 = vld [vmem:[%s3961_s5 + $0x7c] ss:$12 sps:$4 sm:$0xff]   ;;  %2808 = vmatprep.mubr.msk.bf16.mxu1 %vm3485_vm0, %v3483_v18  ;;  %v3055_v33 = vld [vmem:[%s3961_s5 + $0x78] ss:$12 sps:$4 sm:$0xff]   ;;  %v3056_v34 = vld [vmem:[%s3961_s5 + $0x80] ss:$12 sps:$4 sm:$0xff]  }
 0x129   : > { %1137 = vmatpush1.bf16.msra.mxu0 %v3039_v20  ;;  %2796 = vmatprep.subr.bf16.mxu1 %v3483_v18  ;;  %v3057_v35 = vld [vmem:[%s3961_s5 + $0x94] ss:$12 sps:$4 sm:$0xff]   ;;  %v3059_v36 = vld [vmem:[%s3961_s5 + $0x90] ss:$12 sps:$4 sm:$0xff]   ;;  %v3060_v37 = vld [vmem:[%s3961_s5 + $0x98] ss:$12 sps:$4 sm:$0xff]  }
 0x12a   : > { %1138 = vmatprep.subr.bf16.mxu0 %v3041_v22  ;;  %v3061_v38 = vld [vmem:[%s3961_s5 + $0xac] ss:$12 sps:$4 sm:$0xff]   ;;  %v3063_v39 = vld [vmem:[%s3961_s5 + $0xa8] ss:$12 sps:$4 sm:$0xff]   ;;  %v3064_v40 = vld [vmem:[%s3961_s5 + $0xb0] ss:$12 sps:$4 sm:$0xff]  }
 0x12b   : > { %v2628_v57 = vld [vmem:[%s874_s15] ss:$0 sm:$0xff]  ;;  %vm1369_vm6 = vcmask 1043456   ;;  %vm1341_vm7 = vcmask 64512   ;;  %s4523_s21 = sld [smem:[#allocation38_spill]]  ;;  %s4526_s26 = sld [smem:[#allocation49_spill]] }
 0x12c   : > { %2797 = vmatpush3.bf16.msra.mxu1 %v3044_v24  ;;  %v2629_v63 = vld [vmem:[%s877_s4] ss:$0 sm:$0xff]  ;;  %s4528_s29 = sld [smem:[#allocation26_spill]] }
 0x12d   : > { %1139 = vmatpush1.bf16.msra.mxu0 %v3043_v23  ;;  %2798 = vmatprep.subr.bf16.mxu1 %v3483_v18 }
 0x12e   : > { %1140 = vmatprep.subr.bf16.mxu0 %v3045_v25 }
 0x130   : > { %2799 = vmatpush3.bf16.msra.mxu1 %v3048_v27 }
 0x131   : > { %1141 = vmatpush1.bf16.msra.mxu0 %v3047_v26  ;;  %2800 = vmatprep.subr.bf16.mxu1 %v3483_v18  ;;  %s4527_s20 = scalar_lea.vmem %s4526_s26, %s3985_s30 }
 0x132   : > { %1142 = vmatprep.subr.bf16.mxu0 %v3049_v28  ;;  %p2716_p1 = scmp.ne.s32.totalorder %s4528_s29, 1 }
 0x133   : > { %s4529_s24 = sld [smem:[#allocation54_spill]] (!%p2716_p1)  ;;  %s4530_s12 = sld [smem:[#allocation55_spill]] (!%p2716_p1) }
 0x134   : > { %2801 = vmatpush3.bf16.msra.mxu1 %v3052_v30 }
 0x135   : > { %1143 = vmatpush1.bf16.msra.mxu0 %v3051_v29  ;;  %2802 = vmatprep.subr.bf16.mxu1 %v3483_v18 }
 0x136   : > { %1144 = vmatprep.subr.bf16.mxu0 %v3053_v31 }
 0x138   : > { %2803 = vmatpush3.bf16.msra.mxu1 %v3056_v34 }
 0x139   : > { %1145 = vmatpush1.bf16.msra.mxu0 %v3055_v33  ;;  %2804 = vmatprep.subr.bf16.mxu1 %v3483_v18 }
 0x13a   : > { %1146 = vmatprep.subr.bf16.mxu0 %v3057_v35 }
 0x13c   : > { %2805 = vmatpush3.bf16.msra.mxu1 %v3060_v37 }
 0x13d   : > { %1147 = vmatpush1.bf16.msra.mxu0 %v3059_v36  ;;  %2806 = vmatprep.subr.bf16.mxu1 %v3483_v18 }
 0x13e   : > { %1148 = vmatprep.subr.bf16.mxu0 %v3061_v38 }
 0x140   : > { %2807 = vmatpush3.bf16.msra.mxu1 %v3064_v40 }
 0x141   : > { %1149 = vmatpush1.bf16.msra.mxu0 %v3063_v39  ;;  %2818 = vmatprep.subr.bf16.mxu1 %v3483_v18 }
 0x142   : > { %2812 = vmatprep.subr.bf16.mxu0 %v3483_v18 }
 0x1b0   : > { %v904_v7 = vpop.xlane.xlu0 %903 }
 0x1b1   : > { %v908_v8 = vmul.f32 0.0078125, %v904_v7  ;;  %v4102_v7 = vshrl.u32 %v991_v4, 7 }
 0x1b3   : > { %v4040_v9 = vsub.f32 %v4033_v5, %v908_v8  ;;  %v993_v8 = vsub.s32 0, %v4102_v7 }
 0x1b4   : > { %v906_v10 = vpop.xlane.xlu0 %905 }
 0x1b5   : > { %v909_v11 = vmul.f32 0.0078125, %v906_v10  ;;  %v912_v12 = vmul.f32 %v4040_v9, %v4040_v9  ;;  %v926_v59 = vmul.f32 %v2628_v57, %v4040_v9  ;;  %v989_v9 = vld [vmem:[%s4005_s7] sm:$0x7]  ;;  %v997_v10 = vsub.s32 1, %v4102_v7  ;;  %s3486_s7 = smov 64  }
 0x1b7   : > { %v4045_v13 = vsub.f32 %v4035_v6, %v909_v11  ;;  %914 = vadd.xlane.f32.xlu1 %v912_v12  ;;  %v994_v11 = vrot.slane %v989_v9, %v993_v8  ;;  %v998_v12 = vrot.slane %v989_v9, %v997_v10 }
 0x1b9   : > { %v913_v14 = vmul.f32 %v4045_v13, %v4045_v13  ;;  %v927_v60 = vmul.f32 %v2628_v57, %v4045_v13 }
 0x1bb   : > { %916 = vadd.xlane.f32.xlu1 %v913_v14  ;;  %v1001_v14 = vsub.s32 2, %v4102_v7  ;;  %v2699_v7 = vld [vmem:[%s4527_s20] ss:$0 sm:$0xff] }
 0x1bd   : > { %v1002_v26 = vrot.slane %v989_v9, %v1001_v14 }
 0x244   : > { %v915_v41 = vpop.xlane.xlu1 %914 }
 0x245   : > { %v918_v42 = vmul.f32 0.007874016, %v915_v41  ;;  %v4143_v41 = vld [vmem:[%s3990_s2] ss:$0 sm:$0xff] }
 0x247   : > { %3113 = vrsqrt.f32 %v918_v42  ;;  %vm930_vm1 = vcmp.eq.f32.partialorder %v918_v42, inf  ;;  %v933_v47 = vand.u32 2147483648, %v918_v42  ;;  %vm932_vm2 = vcmp.eq.f32.partialorder %v918_v42, 0.0 }
 0x248   : > { %v917_v43 = vpop.xlane.xlu1 %916 }
 0x249   : > { %v919_v44 = vmul.f32 0.007874016, %v917_v43  ;;  %v4146_v43 = vld [vmem:[%s3990_s2 + $0x1] ss:$0 sm:$0xff] }
 0x24b   : > { %3115 = vrsqrt.f32 %v919_v44  ;;  %vm937_vm3 = vcmp.eq.f32.partialorder %v919_v44, inf  ;;  %v940_v53 = vand.u32 2147483648, %v919_v44  ;;  %vm939_vm4 = vcmp.eq.f32.partialorder %v919_v44, 0.0 }
 0x251   : > { %v3114_v45 = vpop.eup %3113 }
 0x252   : > { %v929_v46 = vmul.f32 %v3114_v45, %v918_v42 }
 0x254   : > { %v931_v48 = vsel %vm930_vm1, %v918_v42, %v929_v46 }
 0x255   : > { %v3116_v49 = vpop.eup %3115  ;;  %v934_v50 = vsel %vm932_vm2, %v933_v47, %v931_v48 }
 0x256   : > { %v936_v51 = vmul.f32 %v3116_v49, %v919_v44  ;;  %v942_v52 = vadd.f32 1e-06, %v934_v50 }
 0x258   : > { %v938_v54 = vsel %vm937_vm3, %v919_v44, %v936_v51  ;;  %3117 = vrcp.f32 %v942_v52 }
 0x259   : > { %v941_v55 = vsel %vm939_vm4, %v940_v53, %v938_v54 }
 0x25a   : > { %v943_v56 = vadd.f32 1e-06, %v941_v55 }
 0x25c   : > { %3119 = vrcp.f32 %v943_v56 }
 0x262   : > { %v3118_v58 = vpop.eup %3117 }
 0x263   : > { %v945_v61 = vmul.f32 %v3118_v58, %v926_v59 }
 0x265   : > { %v954_v1 = vadd.f32 %v2629_v63, %v945_v61 }
 0x266   : > { %v3120_v62 = vpop.eup %3119 }
 0x267   : > { %v947_v0 = vmul.f32 %v3120_v62, %v927_v60 }
 0x269   : > { %v955_v2 = vadd.f32 %v2629_v63, %v947_v0 }
 0x26b   : > { %v956_v3 = vpack.c.bf16 %v955_v2, %v954_v1 }
 0x26d   : > { %1167 = vmatmul.mubr.bf16.vlgmr.msra.gmra.mrb[0].mxu0 %v956_v3  ;;  %2809 = vmatmul.mubr.bf16.vlgmr.msra.gmra.mrb[0].mxu1 %v956_v3 }
 0x26e   : > { %2814 = vmatprep.mubr.msk.bf16.mxu0 %vm3485_vm0, %v3483_v18  ;;  %2820 = vmatprep.mubr.msk.bf16.mxu1 %vm3485_vm0, %v3483_v18 }
 0x340   : > { %v1168_v13 = vpop.f32.mrb[0].mxu0  ;;  %v1211_v15 = vpop.f32.mrb[0].mxu1 }
 0x341   : > { %v4112_v16 = vadd.f32 %v1168_v13, %v994_v11  ;;  %v1170_v17 = vpop.f32.mrb[1].mxu0  ;;  %v2810_v19 = vpop.f32.mrb[1].mxu1  ;;  %v1212_v31 = vadd.f32 %v1211_v15, %v1002_v26 }
 0x342   : > { %v1171_v20 = vadd.f32 %v1170_v17, %v998_v12  ;;  %v1172_v21 = vpop.f32.mrb[2].mxu0  ;;  %v1214_v22 = vpop.f32.mrb[2].mxu1 }
 0x343   : > { %v4114_v23 = vadd.f32 %v1172_v21, %v994_v11  ;;  %v1174_v24 = vpop.f32.mrb[3].mxu0  ;;  %v2811_v25 = vpop.f32.mrb[3].mxu1  ;;  %v1215_v35 = vadd.f32 %v1214_v22, %v1002_v26  ;;  %v4124_v37 = vpack.c.bf16 %v1212_v31, %v1212_v31  ;;  %v2732_v1 = vpack.c.bf16 %v4112_v16, %v4112_v16 }
 0x344   : > { %v4117_v27 = vpack.c.bf16 %v1171_v20, %v4112_v16  ;;  %v1175_v28 = vadd.f32 %v1174_v24, %v998_v12 }
 0x345   : > { %v4127_v38 = vpack.c.bf16 %v1215_v35, %v1215_v35  ;;  %v1371_v39 = vsel %vm1369_vm6, %v4124_v37, 0  ;;  %v2733_v2 = vpack.c.bf16 %v4114_v23, %v4114_v23 }
 0x346   : > { %v2730_v29 = vpack.c.bf16 %v1175_v28, %v4114_v23  ;;  %v1246_v30 = vrot.slane %v4117_v27, 4 }
 0x347   : > { %v1417_v40 = vsel %vm1369_vm6, %v4127_v38, 0 }
 0x348   : > { %v1252_v33 = vsel %vm1247_vm5, %v1246_v30, 0  ;;  %v1294_v34 = vrot.slane %v2730_v29, 4 }
 0x349   : > { %2813 = vmatpush3.bf16.xpose.msra.mxu0 %v1252_v33 }
 0x34a   : > { %v1299_v36 = vsel %vm1247_vm5, %v1294_v34, 0  ;;  %2824 = vmatprep.subr.bf16.mxu0 %v3483_v18 }
 0x34b   : > { %2819 = vmatpush3.bf16.xpose.msra.mxu1 %v1299_v36 }
 0x34c   : > { %2830 = vmatprep.subr.bf16.mxu1 %v3483_v18 }
 0x350   : > { %2815 = vmatmul.mubr.msk.bf16.vlgmr.msra.gmra.mrb[4].mxu0 %vm1247_vm5, %v4117_v27 }
 0x351   : > { %2825 = vmatpush3.bf16.msra.mxu0 %v1371_v39  ;;  %2826 = vmatprep.mubr.msk.bf16.mxu0 %vm3485_vm0, %v3483_v18 }
 0x352   : > { %2821 = vmatmul.mubr.msk.bf16.vlgmr.msra.gmra.mrb[4].mxu1 %vm1247_vm5, %v2730_v29  ;;  %2836 = vmatprep.subr.bf16.mxu0 %v3483_v18 }
 0x353   : > { %2831 = vmatpush3.bf16.msra.mxu1 %v1417_v40  ;;  %2832 = vmatprep.mubr.msk.bf16.mxu1 %vm3485_vm0, %v3483_v18 }
 0x354   : > { %2842 = vmatprep.subr.bf16.mxu1 %v3483_v18 }
 0x423   : > { %v1288_v42 = vpop.f32.mrb[4].mxu0 }
 0x424   : > { %v1289_v44 = vadd.f32 %v4143_v41, %v1288_v42  ;;  %v2816_v45 = vpop.f32.mrb[5].mxu0 }
 0x425   : > { %v1291_v46 = vpop.f32.mrb[6].mxu0  ;;  %v1335_v47 = vpop.f32.mrb[4].mxu1 }
 0x426   : > { %v1336_v48 = vadd.f32 %v4146_v43, %v1335_v47  ;;  %v2817_v49 = vpop.f32.mrb[7].mxu0  ;;  %v2822_v50 = vpop.f32.mrb[5].mxu1  ;;  %v1342_v51 = vsel %vm1341_vm7, %v1289_v44, -inf }
 0x427   : > { %v1338_v52 = vpop.f32.mrb[6].mxu1  ;;  %1343 = vmax.xlane.f32.xlu0 %v1342_v51 }
 0x428   : > { %v2823_v53 = vpop.f32.mrb[7].mxu1  ;;  %v1345_v54 = vsel %vm1341_vm7, %v1336_v48, -inf }
 0x429   : > { %1346 = vmax.xlane.f32.xlu1 %v1345_v54 }
 0x43a   : > { %1520 = vrot.lane.b32.xlu1 %v2730_v29, %s3486_s7 }
 0x4b4   : > { %v1344_v55 = vpop.xlane.xlu0 %1343 }
 0x4b5   : > { %v1348_v56 = vsub.f32 %v1289_v44, %v1344_v55 }
 0x4b6   : > { %v1347_v57 = vpop.xlane.xlu1 %1346 }
 0x4b7   : > { %v1350_v58 = vmul.f32 1.442695, %v1348_v56  ;;  %v1349_v59 = vsub.f32 %v1336_v48, %v1347_v57 }
 0x4b9   : > { %3121 = vpow2.f32 %v1350_v58  ;;  %v1352_v60 = vmul.f32 1.442695, %v1349_v59 }
 0x4ba   : > { %v1521_v3 = vpop.permute.xlu1 %1520 }
 0x4bb   : > { %3123 = vpow2.f32 %v1352_v60  ;;  %v1522_v16 = vrot.slane %v1521_v3, 4 }
 0x4bd   : > { %v1530_v22 = vsel %vm1247_vm5, %v1522_v16, 0  ;;  %v3071_v16 = vld [vmem:[%s3967_s8 + $0x30] sm:$0xff]  }
 0x4c3   : > { %v3122_v61 = vpop.eup %3121 }
 0x4c4   : > { %v1354_v62 = vsel %vm1341_vm7, %v3122_v61, 0.0 }
 0x4c5   : > { %v3124_v63 = vpop.eup %3123  ;;  %1355 = vadd.xlane.f32.xlu0 %v1354_v62 }
 0x4c6   : > { %v1357_v0 = vsel %vm1341_vm7, %v3124_v63, 0.0 }
 0x4c7   : > { %1358 = vadd.xlane.f32.xlu1 %v1357_v0 }
 0x4d8   : > { %1472 = vrot.lane.b32.xlu1 %v2732_v1, %s3486_s7 }
 0x4db   : > { %1468 = vrot.lane.b32.xlu0 %v4117_v27, %s3486_s7 }
 0x4dc   : > { %1524 = vrot.lane.b32.xlu1 %v2733_v2, %s3486_s7  ;;  %v3069_v2 = vld [vmem:[%s3967_s8 + $0x20] sm:$0xff]  }
 0x552   : > { %v1356_v4 = vpop.xlane.xlu0 %1355 }
 0x553   : > { %3125 = vrcp.f32 %v1356_v4 }
 0x554   : > { %v1359_v9 = vpop.xlane.xlu1 %1358 }
 0x555   : > { %3127 = vrcp.f32 %v1359_v9 }
 0x556   : > { %v1469_v11 = vpop.permute.xlu0 %1468 }
 0x557   : > { %v1470_v14 = vrot.slane %v1469_v11, 4 }
 0x558   : > { %v1473_v23 = vpop.permute.xlu1 %1472 }
 0x559   : > { %v1478_v20 = vsel %vm1247_vm5, %v1470_v14, 0  ;;  %v3067_v14 = vld [vmem:[%s3967_s8 + $0x10] sm:$0xff]  }
 0x55c   : > { %v1525_v24 = vpop.permute.xlu1 %1524 }
 0x55d   : > { %v3126_v12 = vpop.eup %3125 }
 0x55e   : > { %v1362_v13 = vmul.f32 %v3126_v12, %v3122_v61  ;;  %v3070_v12 = vld [vmem:[%s3967_s8 + $0x28] sm:$0xff]  }
 0x55f   : > { %v3128_v15 = vpop.eup %3127 }
 0x560   : > { %v1363_v17 = vmul.f32 %v3128_v15, %v3124_v63  ;;  %v1364_v19 = vpack.c.bf16 %v1362_v13, %v1362_v13  ;;  %v3066_v13 = vld [vmem:[%s3967_s8 + $0x8] sm:$0xff]   ;;  %v3068_v15 = vld [vmem:[%s3967_s8 + $0x18] sm:$0xff]  }
 0x562   : > { %2827 = vmatmul.mubr.msk.bf16.vlgmr.msra.gmra.mrb[8].mxu0 %vm1341_vm7, %v1364_v19  ;;  %v1365_v21 = vpack.c.bf16 %v1363_v17, %v1363_v17  ;;  %v3072_v17 = vld [vmem:[%s3967_s8 + $0x38] sm:$0xff]  }
 0x563   : > { %2837 = vmatpush3.bf16.xpose.msra.mxu0 %v1478_v20  ;;  %2838 = vmatprep.mubr.msk.bf16.mxu0 %vm3485_vm0, %v3483_v18 }
 0x564   : > { %2833 = vmatmul.mubr.msk.bf16.vlgmr.msra.gmra.mrb[8].mxu1 %vm1341_vm7, %v1365_v21  ;;  %2848 = vmatprep.subr.bf16.mxu0 %v3483_v18 }
 0x565   : > { %2843 = vmatpush3.bf16.xpose.msra.mxu1 %v1530_v22  ;;  %2844 = vmatprep.mubr.msk.bf16.mxu1 %vm3485_vm0, %v3483_v18 }
 0x566   : > { %2854 = vmatprep.subr.bf16.mxu1 %v3483_v18 }
 0x56a   : > { %2839 = vmatmul.mubr.msk.bf16.vlgmr.msra.gmra.mrb[12].mxu0 %vm1247_vm5, %v1473_v23 }
 0x56b   : > { %2850 = vmatprep.mubr.msk.bf16.mxu0 %vm3485_vm0, %v3483_v18 }
 0x56c   : > { %2845 = vmatmul.mubr.msk.bf16.vlgmr.msra.gmra.mrb[12].mxu1 %vm1247_vm5, %v1525_v24 }
 0x56d   : > { %2856 = vmatprep.mubr.msk.bf16.mxu1 %vm3485_vm0, %v3483_v18 }
 0x635   : > { %v4179_v25 = vpop.f32.mrb[8].mxu0 }
 0x636   : > { %v2828_v26 = vpop.f32.mrb[9].mxu0 }
 0x637   : > { %v1410_v27 = vpop.f32.mrb[10].mxu0  ;;  %v4181_v28 = vpop.f32.mrb[8].mxu1 }
 0x638   : > { %v1459_v29 = vpack.c.bf16 %v4181_v28, %v4179_v25  ;;  %v2829_v30 = vpop.f32.mrb[11].mxu0  ;;  %v2834_v31 = vpop.f32.mrb[9].mxu1 }
 0x639   : > { %v1456_v33 = vpop.f32.mrb[10].mxu1 }
 0x63a   : > { %v2835_v34 = vpop.f32.mrb[11].mxu1 }
 0x63d   : > { %v1514_v35 = vpop.f32.mrb[12].mxu0 }
 0x63e   : > { %v1515_v36 = vadd.f32 %v4143_v41, %v1514_v35  ;;  %v2840_v39 = vpop.f32.mrb[13].mxu0 }
 0x63f   : > { %v1517_v40 = vpop.f32.mrb[14].mxu0  ;;  %v1566_v42 = vpop.f32.mrb[12].mxu1 }
 0x640   : > { %v1567_v44 = vadd.f32 %v4146_v43, %v1566_v42  ;;  %v2841_v45 = vpop.f32.mrb[15].mxu0  ;;  %v2846_v46 = vpop.f32.mrb[13].mxu1  ;;  %v1572_v47 = vsel %vm1341_vm7, %v1515_v36, -inf }
 0x641   : > { %v1569_v48 = vpop.f32.mrb[14].mxu1  ;;  %1573 = vmax.xlane.f32.xlu0 %v1572_v47 }
 0x642   : > { %v2847_v49 = vpop.f32.mrb[15].mxu1  ;;  %v1575_v50 = vsel %vm1341_vm7, %v1567_v44, -inf }
 0x643   : > { %1576 = vmax.xlane.f32.xlu1 %v1575_v50 }
 0x654   : > { %1644 = vrot.lane.b32.xlu1 %v4127_v38, %s3486_s7 }
 0x6ce   : > { %v1574_v51 = vpop.xlane.xlu0 %1573 }
 0x6cf   : > { %v1578_v41 = vsub.f32 %v1515_v36, %v1574_v51 }
 0x6d0   : > { %v1577_v52 = vpop.xlane.xlu1 %1576 }
 0x6d1   : > { %v1580_v53 = vmul.f32 1.442695, %v1578_v41  ;;  %v1579_v54 = vsub.f32 %v1567_v44, %v1577_v52  ;;  %v3075_v41 = vld [vmem:[%s3973_s16 + $0x4] ss:$8 sps:$4 sm:$0xff]   ;;  %v3073_v52 = vld [vmem:[%s3973_s16] ss:$8 sps:$4 sm:$0xff]  }
 0x6d3   : > { %3129 = vpow2.f32 %v1580_v53  ;;  %v1582_v43 = vmul.f32 1.442695, %v1579_v54  ;;  %v3078_v53 = vld [vmem:[%s3973_s16 + $0x14] ss:$8 sps:$4 sm:$0xff]   ;;  %v3076_v54 = vld [vmem:[%s3973_s16 + $0x10] ss:$8 sps:$4 sm:$0xff]  }
 0x6d4   : > { %v1645_v55 = vpop.permute.xlu1 %1644 }
 0x6d5   : > { %3131 = vpow2.f32 %v1582_v43  ;;  %v1650_v56 = vsel %vm1369_vm6, %v1645_v55, 0  ;;  %v3081_v43 = vld [vmem:[%s3973_s16 + $0x24] ss:$8 sps:$4 sm:$0xff]   ;;  %v3079_v55 = vld [vmem:[%s3973_s16 + $0x20] ss:$8 sps:$4 sm:$0xff]  }
 0x6d6   : > { %2855 = vmatpush3.bf16.msra.mxu1 %v1650_v56  ;;  %v3084_v56 = vld [vmem:[%s3973_s16 + $0x34] ss:$8 sps:$4 sm:$0xff]  }
 0x6d7   : > { %2872 = vmatprep.subr.bf16.mxu1 %v3483_v18 }
 0x6dd   : > { %v3130_v57 = vpop.eup %3129 }
 0x6de   : > { %v1584_v58 = vsel %vm1341_vm7, %v3130_v57, 0.0 }
 0x6df   : > { %v3132_v59 = vpop.eup %3131  ;;  %1585 = vadd.xlane.f32.xlu0 %v1584_v58  ;;  %v3087_v58 = vld [vmem:[%s3973_s16 + $0x44] ss:$8 sps:$4 sm:$0xff]  }
 0x6e0   : > { %v1587_v38 = vsel %vm1341_vm7, %v3132_v59, 0.0 }
 0x6e3   : > { %1588 = vadd.xlane.f32.xlu0 %v1587_v38  ;;  %v3090_v38 = vld [vmem:[%s3973_s16 + $0x54] ss:$8 sps:$4 sm:$0xff]  }
 0x6f9   : > { %1596 = vrot.lane.b32.xlu0 %v4124_v37, %s3486_s7  ;;  %v3065_v37 = vld [vmem:[%s3967_s8] sm:$0xff]   ;;  %s4521_s8 = sld [smem:[#allocation45_spill]] }
 0x6ff   : > { %s4522_s27 = scalar_lea.vmem %s4521_s8, %s3985_s30 }
 0x700   : > { %v2680_v36 = vld [vmem:[%s4522_s27] ss:$0 sm:$0xff] }
 0x76c   : > { %v1586_v60 = vpop.xlane.xlu0 %1585 }
 0x76d   : > { %3133 = vrcp.f32 %v1586_v60  ;;  %v3088_v60 = vld [vmem:[%s3973_s16 + $0x50] ss:$8 sps:$4 sm:$0xff]  }
 0x770   : > { %v1589_v61 = vpop.xlane.xlu0 %1588 }
 0x771   : > { %3135 = vrcp.f32 %v1589_v61  ;;  %v3093_v61 = vld [vmem:[%s3973_s16 + $0x64] ss:$8 sps:$4 sm:$0xff]  }
 0x774   : > { %v1597_v62 = vpop.permute.xlu0 %1596 }
 0x775   : > { %v1602_v63 = vsel %vm1369_vm6, %v1597_v62, 0  ;;  %v3091_v62 = vld [vmem:[%s3973_s16 + $0x60] ss:$8 sps:$4 sm:$0xff]  }
 0x776   : > { %2849 = vmatpush3.bf16.msra.mxu0 %v1602_v63  ;;  %v3096_v63 = vld [vmem:[%s3973_s16 + $0x74] ss:$8 sps:$4 sm:$0xff]  }
 0x777   : > { %v3134_v0 = vpop.eup %3133  ;;  %2860 = vmatprep.subr.bf16.mxu0 %v3483_v18 }
 0x778   : > { %v1592_v1 = vmul.f32 %v3134_v0, %v3130_v57  ;;  %v3082_v57 = vld [vmem:[%s3973_s16 + $0x30] ss:$8 sps:$4 sm:$0xff]  }
 0x779   : > { %v3094_v0 = vld [vmem:[%s3973_s16 + $0x70] ss:$8 sps:$4 sm:$0xff]  }
 0x77a   : > { %v1594_v3 = vpack.c.bf16 %v1592_v1, %v1592_v1  ;;  %v3097_v1 = vld [vmem:[%s4523_s21 + $0x40] sm:$0xff]  }
 0x77b   : > { %v3136_v4 = vpop.eup %3135 }
 0x77c   : > { %v1593_v9 = vmul.f32 %v3136_v4, %v3132_v59  ;;  %2851 = vmatmul.mubr.msk.bf16.vlgmr.msra.gmra.mrb[16].mxu0 %vm1341_vm7, %v1594_v3  ;;  %v3085_v59 = vld [vmem:[%s3973_s16 + $0x40] ss:$8 sps:$4 sm:$0xff]   ;;  %v3099_v3 = vld [vmem:[%s4523_s21 + $0x48] sm:$0xff]  }
 0x77d   : > { %2861 = vmatpush3.bf16.msra.mxu0 %v3069_v2  ;;  %2868 = vmatprep.mubr.msk.bf16.mxu0 %vm3485_vm0, %v3483_v18  ;;  %v3098_v2 = vld [vmem:[%s4523_s21] sm:$0xff]   ;;  %v3100_v4 = vld [vmem:[%s4523_s21 + $0x8] sm:$0xff]  }
 0x77e   : > { %v1595_v11 = vpack.c.bf16 %v1593_v9, %v1593_v9  ;;  %2862 = vmatprep.subr.bf16.mxu0 %v3483_v18  ;;  %v3101_v9 = vld [vmem:[%s4523_s21 + $0x50] sm:$0xff]  }
 0x780   : > { %2857 = vmatmul.mubr.msk.bf16.vlgmr.msra.gmra.mrb[16].mxu1 %vm1341_vm7, %v1595_v11  ;;  %v3103_v11 = vld [vmem:[%s4523_s21 + $0x58] sm:$0xff]  }
 0x781   : > { %2873 = vmatpush3.bf16.msra.mxu1 %v3065_v37  ;;  %2880 = vmatprep.mubr.msk.bf16.mxu1 %vm3485_vm0, %v3483_v18  ;;  %v3102_v37 = vld [vmem:[%s4523_s21 + $0x10] sm:$0xff]  }
 0x782   : > { %2874 = vmatprep.subr.bf16.mxu1 %v3483_v18  ;;  %2863 = vmatpush3.bf16.msra.mxu0 %v3070_v12  ;;  %v3104_v12 = vld [vmem:[%s4523_s21 + $0x18] sm:$0xff]  }
 0x783   : > { %2864 = vmatprep.subr.bf16.mxu0 %v3483_v18 }
 0x785   : > { %2875 = vmatpush3.bf16.msra.mxu1 %v3066_v13  ;;  %v3105_v13 = vld [vmem:[%s4523_s21 + $0x60] sm:$0xff]  }
 0x786   : > { %2876 = vmatprep.subr.bf16.mxu1 %v3483_v18  ;;  %2865 = vmatpush3.bf16.msra.mxu0 %v3071_v16 }
 0x787   : > { %2866 = vmatprep.subr.bf16.mxu0 %v3483_v18 }
 0x789   : > { %2877 = vmatpush3.bf16.msra.mxu1 %v3067_v14  ;;  %v3106_v14 = vld [vmem:[%s4523_s21 + $0x20] sm:$0xff]  }
 0x78a   : > { %2878 = vmatprep.subr.bf16.mxu1 %v3483_v18  ;;  %2867 = vmatpush3.bf16.msra.mxu0 %v3072_v17 }
 0x78b   : > { %2011 = vmatprep.subr.bf16.mxu0 %v3075_v41  ;;  %v1919_v41 = vld [vmem:[%s4010_s1] sm:$0x3] }
 0x78d   : > { %2879 = vmatpush3.bf16.msra.mxu1 %v3068_v15  ;;  %v3107_v15 = vld [vmem:[%s4523_s21 + $0x68] sm:$0xff]  }
 0x78e   : > { %2770 = vmatprep.subr.bf16.mxu1 %v3097_v1 }
 0x790   : > { %2881 = vmatmul.mubr.msk.bf16.vlgmr.msra.gmra.mrb[20].mxu1 %vm1247_vm5, %v1459_v29 }
 0x791   : > { %2771 = vmatpush3.bf16.msra.mxu1 %v3098_v2 }
 0x792   : > { %2772 = vmatprep.subr.bf16.mxu1 %v3099_v3 }
 0x795   : > { %2773 = vmatpush3.bf16.msra.mxu1 %v3100_v4 }
 0x796   : > { %2774 = vmatprep.subr.bf16.mxu1 %v3101_v9 }
 0x799   : > { %2775 = vmatpush3.bf16.msra.mxu1 %v3102_v37 }
 0x79a   : > { %2776 = vmatprep.subr.bf16.mxu1 %v3103_v11 }
 0x79d   : > { %2777 = vmatpush3.bf16.msra.mxu1 %v3104_v12 }
 0x79e   : > { %2778 = vmatprep.subr.bf16.mxu1 %v3105_v13 }
 0x7a1   : > { %2779 = vmatpush3.bf16.msra.mxu1 %v3106_v14 }
 0x7a2   : > { %2780 = vmatprep.subr.bf16.mxu1 %v3107_v15 }
 0x84f   : > { %v1638_v19 = vpop.f32.mrb[16].mxu0 }
 0x850   : > { %v2852_v20 = vpop.f32.mrb[17].mxu0 }
 0x851   : > { %v1641_v21 = vpop.f32.mrb[18].mxu0 }
 0x852   : > { %v2853_v22 = vpop.f32.mrb[19].mxu0 }
 0x853   : > { %v1686_v23 = vpop.f32.mrb[16].mxu1 }
 0x854   : > { %v1692_v24 = vpack.c.bf16 %v1686_v23, %v1638_v19  ;;  %v2858_v26 = vpop.f32.mrb[17].mxu1 }
 0x855   : > { %v1689_v27 = vpop.f32.mrb[18].mxu1 }
 0x856   : > { %v2859_v30 = vpop.f32.mrb[19].mxu1  ;;  %2869 = vmatmul.mubr.msk.bf16.vlgmr.msra.gmra.mrb[20].mxu0 %vm1247_vm5, %v1692_v24 }
 0x857   : > { %2043 = vmatprep.mubr.bf16.mxu0 %v3484_v32  ;;  %2012 = vmatpush1.bf16.msra.mxu0 %v3073_v52  ;;  %v1924_v52 = vrot.slane %v1919_v41, %v993_v8 }
 0x858   : > { %2013 = vmatprep.subr.bf16.mxu0 %v3078_v53  ;;  %v1928_v53 = vrot.slane %v1919_v41, %v997_v10 }
 0x85b   : > { %2014 = vmatpush1.bf16.msra.mxu0 %v3076_v54 }
 0x85c   : > { %2015 = vmatprep.subr.bf16.mxu0 %v3081_v43 }
 0x85f   : > { %2016 = vmatpush1.bf16.msra.mxu0 %v3079_v55 }
 0x860   : > { %2017 = vmatprep.subr.bf16.mxu0 %v3084_v56 }
 0x863   : > { %v1830_v25 = vpop.f32.mrb[20].mxu1  ;;  %2018 = vmatpush1.bf16.msra.mxu0 %v3082_v57 }
 0x864   : > { %v2882_v28 = vpop.f32.mrb[21].mxu1  ;;  %2019 = vmatprep.subr.bf16.mxu0 %v3087_v58 }
 0x865   : > { %v1833_v29 = vpop.f32.mrb[22].mxu1 }
 0x866   : > { %v2883_v18 = vpop.f32.mrb[23].mxu1 }
 0x867   : > { %2020 = vmatpush1.bf16.msra.mxu0 %v3085_v59 }
 0x868   : > { %2021 = vmatprep.subr.bf16.mxu0 %v3090_v38 }
 0x86b   : > { %2022 = vmatpush1.bf16.msra.mxu0 %v3088_v60 }
 0x86c   : > { %2023 = vmatprep.subr.bf16.mxu0 %v3093_v61 }
 0x86f   : > { %2024 = vmatpush1.bf16.msra.mxu0 %v3091_v62 }
 0x870   : > { %2025 = vmatprep.subr.bf16.mxu0 %v3096_v63 }
 0x873   : > { %2026 = vmatpush1.bf16.msra.mxu0 %v3094_v0 }
 0x929   : > { %v1762_v31 = vpop.f32.mrb[20].mxu0 }
 0x92a   : > { %v1831_v33 = vadd.f32 %v1830_v25, %v1762_v31  ;;  %v2870_v34 = vpop.f32.mrb[21].mxu0 }
 0x92b   : > { %v1765_v35 = vpop.f32.mrb[22].mxu0 }
 0x92c   : > { %v1837_v39 = vadd.f32 %v1831_v33, %v4033_v5  ;;  %v1834_v40 = vadd.f32 %v1833_v29, %v1765_v35  ;;  %v2871_v42 = vpop.f32.mrb[23].mxu0  ;;  %v2681_v33 = vld [vmem:[%s880_s10] ss:$0 sm:$0xff] }
 0x92d   : > { %v2682_v42 = vld [vmem:[%s883_s13] ss:$0 sm:$0xff] }
 0x92e   : > { %v1838_v32 = vadd.f32 %v1834_v40, %v4035_v6  ;;  %v4232_v44 = vadd.f32 %v2680_v36, %v1837_v39 }
 0x930   : > { %1850 = vadd.xlane.f32.xlu1 %v4232_v44  ;;  %v4235_v45 = vadd.f32 %v2680_v36, %v1838_v32 }
 0x932   : > { %1852 = vadd.xlane.f32.xlu0 %v4235_v45 }
 0x9bd   : > { %v1851_v46 = vpop.xlane.xlu1 %1850 }
 0x9be   : > { %v1854_v47 = vmul.f32 0.0078125, %v1851_v46 }
 0x9bf   : > { %v1853_v48 = vpop.xlane.xlu0 %1852 }
 0x9c0   : > { %v4239_v5 = vsub.f32 %v4232_v44, %v1854_v47  ;;  %v1855_v6 = vmul.f32 0.0078125, %v1853_v48 }
 0x9c2   : > { %v4242_v49 = vsub.f32 %v4235_v45, %v1855_v6  ;;  %v1858_v50 = vmul.f32 %v4239_v5, %v4239_v5  ;;  %v1872_v35 = vmul.f32 %v2681_v33, %v4239_v5  ;;  %v3108_v6 = vld [vmem:[%s4523_s21 + $0x28] sm:$0xff]   ;;  %v3109_v5 = vld [vmem:[%s4523_s21 + $0x70] sm:$0xff]  }
 0x9c3   : > { %2781 = vmatpush3.bf16.msra.mxu1 %v3108_v6 }
 0x9c4   : > { %1860 = vadd.xlane.f32.xlu0 %v1858_v50  ;;  %v1859_v51 = vmul.f32 %v4242_v49, %v4242_v49  ;;  %v1873_v36 = vmul.f32 %v2681_v33, %v4242_v49  ;;  %v3110_v50 = vld [vmem:[%s4523_s21 + $0x30] sm:$0xff]   ;;  %2782 = vmatprep.subr.bf16.mxu1 %v3109_v5  ;;  %v3111_v49 = vld [vmem:[%s4523_s21 + $0x78] sm:$0xff]  }
 0x9c6   : > { %1862 = vadd.xlane.f32.xlu1 %v1859_v51  ;;  %v3112_v51 = vld [vmem:[%s4523_s21 + $0x38] sm:$0xff]  }
 0x9c7   : > { %2783 = vmatpush3.bf16.msra.mxu1 %v3110_v50 }
 0x9c8   : > { %2784 = vmatprep.subr.bf16.mxu1 %v3111_v49 }
 0x9cb   : > { %2785 = vmatpush3.bf16.msra.mxu1 %v3112_v51 }
 0xa51   : > { %v1861_v16 = vpop.xlane.xlu0 %1860 }
 0xa52   : > { %v1864_v17 = vmul.f32 0.007874016, %v1861_v16 }
 0xa53   : > { %v1863_v19 = vpop.xlane.xlu1 %1862 }
 0xa54   : > { %3137 = vrsqrt.f32 %v1864_v17  ;;  %v1865_v20 = vmul.f32 0.007874016, %v1863_v19  ;;  %vm1876_vm8 = vcmp.eq.f32.partialorder %v1864_v17, inf  ;;  %v1879_v23 = vand.u32 2147483648, %v1864_v17 }
 0xa55   : > { %vm1878_vm9 = vcmp.eq.f32.partialorder %v1864_v17, 0.0 }
 0xa56   : > { %3139 = vrsqrt.f32 %v1865_v20  ;;  %vm1883_vm10 = vcmp.eq.f32.partialorder %v1865_v20, inf  ;;  %v1886_v28 = vand.u32 2147483648, %v1865_v20  ;;  %vm1885_vm11 = vcmp.eq.f32.partialorder %v1865_v20, 0.0 }
 0xa5e   : > { %v3138_v21 = vpop.eup %3137 }
 0xa5f   : > { %v1875_v22 = vmul.f32 %v3138_v21, %v1864_v17 }
 0xa60   : > { %v3140_v24 = vpop.eup %3139 }
 0xa61   : > { %v1877_v26 = vsel %vm1876_vm8, %v1864_v17, %v1875_v22  ;;  %v1882_v30 = vmul.f32 %v3140_v24, %v1865_v20 }
 0xa62   : > { %v1880_v27 = vsel %vm1878_vm9, %v1879_v23, %v1877_v26 }
 0xa63   : > { %v1888_v25 = vadd.f32 1e-06, %v1880_v27  ;;  %v1884_v29 = vsel %vm1883_vm10, %v1865_v20, %v1882_v30 }
 0xa64   : > { %v1887_v18 = vsel %vm1885_vm11, %v1886_v28, %v1884_v29 }
 0xa65   : > { %3141 = vrcp.f32 %v1888_v25  ;;  %v1889_v31 = vadd.f32 1e-06, %v1887_v18 }
 0xa67   : > { %3143 = vrcp.f32 %v1889_v31 }
 0xa6f   : > { %v3142_v34 = vpop.eup %3141 }
 0xa70   : > { %v1891_v39 = vmul.f32 %v3142_v34, %v1872_v35 }
 0xa71   : > { %v3144_v40 = vpop.eup %3143 }
 0xa72   : > { %v1893_v32 = vmul.f32 %v3144_v40, %v1873_v36  ;;  %v1900_v46 = vadd.f32 %v2682_v42, %v1891_v39 }
 0xa74   : > { %v1901_v47 = vadd.f32 %v2682_v42, %v1893_v32  ;;  %v2717_v42 = vld [vmem:[%s4529_s24] ss:$0 sm:$0xff] (!%p2716_p1) }
 0xa76   : > { %v1902_v48 = vpack.c.bf16 %v1901_v47, %v1900_v46  ;;  %v2718_v47 = vld [vmem:[%s4530_s12] ss:$0 sm:$0xff] (!%p2716_p1) }
 0xa78   : > { %2044 = vmatmul.mubr.bf16.vlgmr.msra.gmra.mrb[24].mxu0 %v1902_v48 }
 0xb4b   : > { %v2045_v54 = vpop.f32.mrb[24].mxu0 }
 0xb4c   : > { %v2046_v43 = vadd.f32 %v2045_v54, %v1924_v52  ;;  %v2047_v55 = vpop.f32.mrb[25].mxu0 }
 0xb4d   : > { %v2048_v56 = vadd.f32 %v2047_v55, %v1928_v53  ;;  %v2049_v57 = vpop.f32.mrb[26].mxu0 }
 0xb4e   : > { %v2050_v58 = vadd.f32 %v2049_v57, %v1924_v52  ;;  %v2051_v59 = vpop.f32.mrb[27].mxu0  ;;  %v2054_v60 = vmax.f32 %v2046_v43, 0.0 }
 0xb4f   : > { %v2052_v38 = vadd.f32 %v2051_v59, %v1928_v53  ;;  %v2055_v62 = vmax.f32 %v2048_v56, 0.0 }
 0xb50   : > { %v2056_v61 = vmax.f32 %v2050_v58, 0.0 }
 0xb51   : > { %v2057_v63 = vmax.f32 %v2052_v38, 0.0 }
 0xb52   : > { %v2058_v0 = vpack.c.bf16 %v2056_v61, %v2054_v60 }
 0xb53   : > { %v2059_v1 = vpack.c.bf16 %v2057_v63, %v2055_v62 }
 0xb55   : > { %2227 = vmatprep.mubr.bf16.mxu1 %v2059_v1 }
 0xb56   : > { %2228 = vmatmul.mubr.bf16.vlgmr.msra.gmra.mrb[24].mxu1 %v2058_v0 }
 0xc29   : > { %v2786_v8 = vpop.f32.mrb[24].mxu1 }
 0xc2a   : > { %v2787_v10 = vpop.f32.mrb[25].mxu1 }
 0xc2b   : > { %v2788_v2 = vadd.f32 %v2787_v10, %v2786_v8  ;;  %v2789_v3 = vpop.f32.mrb[26].mxu1 }
 0xc2c   : > { %v2790_v4 = vpop.f32.mrb[27].mxu1 }
 0xc2d   : > { %v2230_v9 = vadd.f32 %v2788_v2, %v2699_v7  ;;  %v2791_v37 = vadd.f32 %v2790_v4, %v2789_v3  ;;  %2243 = sbr.rel (%p2716_p1) target bundleno = 3472 (0xd90), region = 120 }
 0xc2f   : > { %v2236_v11 = vadd.f32 %v2230_v9, %v4232_v44  ;;  %v2233_v12 = vadd.f32 %v2791_v37, %v2699_v7 }
 0xc31   : > { %2238 = vst [vmem:[#allocation2] sm:$0xff] %v2236_v11  ;;  %v2237_v13 = vadd.f32 %v2233_v12, %v4235_v45 }
 0xc33   : > { %2239 = vst [vmem:[#allocation2 + $0x8] sm:$0xff] %v2237_v13 }
 0xc38   : > { %v2244_v14 = vld [vmem:[#allocation2] sm:$0xff] }
 0xc39   : > { %2248 = vadd.xlane.f32.xlu0 %v2244_v14 }
 0xc3a   : > { %v2245_v15 = vld [vmem:[#allocation2 + $0x8] sm:$0xff] }
 0xc3d   : > { %2250 = vadd.xlane.f32.xlu0 %v2245_v15 }
 0xcc6   : > { %v2249_v16 = vpop.xlane.xlu0 %2248 }
 0xcc7   : > { %v2252_v17 = vmul.f32 0.0078125, %v2249_v16 }
 0xcc9   : > { %v2254_v19 = vsub.f32 %v2244_v14, %v2252_v17 }
 0xcca   : > { %v2251_v20 = vpop.xlane.xlu0 %2250 }
 0xccb   : > { %v2253_v21 = vmul.f32 0.0078125, %v2251_v20  ;;  %v2256_v22 = vmul.f32 %v2254_v19, %v2254_v19  ;;  %v2270_v32 = vmul.f32 %v2717_v42, %v2254_v19 }
 0xccd   : > { %v2255_v23 = vsub.f32 %v2245_v15, %v2253_v21  ;;  %2258 = vadd.xlane.f32.xlu1 %v2256_v22 }
 0xccf   : > { %v2257_v44 = vmul.f32 %v2255_v23, %v2255_v23  ;;  %v2271_v6 = vmul.f32 %v2717_v42, %v2255_v23 }
 0xcd1   : > { %2260 = vadd.xlane.f32.xlu1 %v2257_v44 }
 0xd5a   : > { %v2259_v24 = vpop.xlane.xlu1 %2258 }
 0xd5b   : > { %v2262_v45 = vmul.f32 0.007874016, %v2259_v24 }
 0xd5d   : > { %3145 = vrsqrt.f32 %v2262_v45  ;;  %vm2274_vm12 = vcmp.eq.f32.partialorder %v2262_v45, inf  ;;  %v2277_v28 = vand.u32 2147483648, %v2262_v45  ;;  %vm2276_vm13 = vcmp.eq.f32.partialorder %v2262_v45, 0.0 }
 0xd5e   : > { %v2261_v26 = vpop.xlane.xlu1 %2260 }
 0xd5f   : > { %v2263_v27 = vmul.f32 0.007874016, %v2261_v26 }
 0xd61   : > { %3147 = vrsqrt.f32 %v2263_v27  ;;  %vm2281_vm14 = vcmp.eq.f32.partialorder %v2263_v27, inf  ;;  %v2284_v35 = vand.u32 2147483648, %v2263_v27  ;;  %vm2283_vm15 = vcmp.eq.f32.partialorder %v2263_v27, 0.0 }
 0xd67   : > { %v3146_v30 = vpop.eup %3145 }
 0xd68   : > { %v2273_v25 = vmul.f32 %v3146_v30, %v2262_v45 }
 0xd6a   : > { %v2275_v29 = vsel %vm2274_vm12, %v2262_v45, %v2273_v25 }
 0xd6b   : > { %v3148_v18 = vpop.eup %3147  ;;  %v2278_v31 = vsel %vm2276_vm13, %v2277_v28, %v2275_v29 }
 0xd6c   : > { %v2286_v33 = vadd.f32 1e-06, %v2278_v31  ;;  %v2280_v34 = vmul.f32 %v3148_v18, %v2263_v27 }
 0xd6e   : > { %3149 = vrcp.f32 %v2286_v33  ;;  %v2282_v36 = vsel %vm2281_vm14, %v2263_v27, %v2280_v34 }
 0xd6f   : > { %v2285_v39 = vsel %vm2283_vm15, %v2284_v35, %v2282_v36 }
 0xd70   : > { %v2287_v40 = vadd.f32 1e-06, %v2285_v39 }
 0xd72   : > { %3151 = vrcp.f32 %v2287_v40 }
 0xd78   : > { %v3150_v46 = vpop.eup %3149 }
 0xd79   : > { %v2289_v48 = vmul.f32 %v3150_v46, %v2270_v32 }
 0xd7b   : > { %v2298_v5 = vadd.f32 %v2718_v47, %v2289_v48 }
 0xd7c   : > { %v3152_v50 = vpop.eup %3151 }
 0xd7d   : > { %v2300_v49 = vrot.slane %v2298_v5, 4  ;;  %v2291_v51 = vmul.f32 %v3152_v50, %v2271_v6 }
 0xd7f   : > { %v2301_v41 = vadd.f32 %v2300_v49, %v2298_v5  ;;  %v2299_v52 = vadd.f32 %v2718_v47, %v2291_v51 }
 0xd81   : > { %v2302_v53 = vrot.slane %v2301_v41, 2  ;;  %v2306_v54 = vrot.slane %v2299_v52, 4 }
 0xd83   : > { %v2303_v43 = vadd.f32 %v2302_v53, %v2301_v41  ;;  %v2307_v55 = vadd.f32 %v2306_v54, %v2299_v52 }
 0xd85   : > { %v2304_v56 = vrot.slane %v2303_v43, 1  ;;  %v2308_v57 = vrot.slane %v2307_v55, 2 }
 0xd87   : > { %v2305_v58 = vadd.f32 %v2304_v56, %v2303_v43  ;;  %v2309_v59 = vadd.f32 %v2308_v57, %v2307_v55 }
 0xd89   : > { %v2313_v38 = vmul.f32 0.125, %v2305_v58  ;;  %v2310_v60 = vrot.slane %v2309_v59, 1 }
 0xd8b   : > { %2315 = vst [vmem:[%s4028_s0] sm:$0x1] %v2313_v38  ;;  %v2311_v61 = vadd.f32 %v2310_v60, %v2309_v59 }
 0xd8d   : > { %v2314_v62 = vmul.f32 0.125, %v2311_v61 }
 0xd8f   : > { %2316 = vst [vmem:[%s4028_s0 + $0x1] sm:$0x1] %v2314_v62 }
 0xd90 PF: > { %s4531_s13 = sld [smem:[#allocation27_spill]]  ;;  %s4532_s9 = sld [smem:[#allocation37_spill]] }
 0xd91   : > { %s4533_s25 = sld [smem:[#allocation35_spill]]  ;;  %s4534_s23 = sld [smem:[#allocation56_spill]] }
 0xd92   : > { %s2331_s4 = sshll.u32 %s4028_s0, 4  ;;  %s3487_s27 = smov [#allocation14]   ;;  %s4320_s4 = int_to_ptr.vmem [resolvable:$true] %s2331_s4 }
 0xd93   : > { %s3331_s8 = scalar_lea.vmem %s4320_s4, 32  ;;  %s3335_s21 = sshll.u32 %s3487_s27, 4  ;;  %s3336_s21 = int_to_ptr.vmem [resolvable:$false] %s3335_s21 }
 0xd94   : > { %p3332_p3 = scmp.ne.s32.totalorder %s4320_s4, %s3331_s8  ;;  %s3337_s16 = scalar_lea.vmem %s3336_s21, 64 }
 0xd95   : > { %p3338_p2 = scmp.lt.s32.totalorder %s4320_s4, %s3336_s21  ;;  %p3339_p0 = scmp.lt.s32.totalorder %s3337_s16, %s3331_s8 }
 0xd96   : > { %s2734_s28 = sshll.u32 %s4531_s13, 5  ;;  %s2318_s5 = scalar_lea.sflag [#allocation5], %s4532_s9 }
 0xd97   : > { %s4317_s7 = scalar_lea.hbm %s4534_s23, %s2734_s28  ;;  %p4535_p12 = scmp.ne.s32.totalorder %s4533_s25, 0 }
 0xd98   : > { %p3340_p10 = por %p3339_p0, %p3338_p2 }
 0xd99   : > { %p3333_p9 = pnand %p3332_p3, %p4535_p12 }
 0xd9b   : > { %p3334_p11 = pneg %p3333_p9 }
 0xd9d   : > { %p3341_p4 = pnand %p3340_p10, %p3334_p11 }
 0xd9f   : > { %3344 = shalt.err (!%p3341_p4)
}
 0xda0   : > { %s3345_s0 = scalar_lea.hbm %s4317_s7, 32  ;;  %s3349_s11 = scalar_lea.hbm %s4534_s23, 64 }
 0xda1   : > { %p3346_p8 = scmp.ne.s32.totalorder %s4317_s7, %s3345_s0  ;;  %p3350_p5 = scmp.lt.u32.totalorder %s4317_s7, %s4534_s23 }
 0xda2   : > { %p3351_p6 = scmp.lt.u32.totalorder %s3349_s11, %s3345_s0  ;;  %p3353_p3 = scmp.lt.u32.totalorder %s3345_s0, %s4317_s7 }
 0xda3   : > { %p3347_p7 = pnand %p3346_p8, %p4535_p12 }
 0xda4   : > { %p3352_p1 = por %p3351_p6, %p3350_p5 }
 0xda5   : > { %p3348_p13 = pneg %p3347_p7 }
 0xda6   : > { %p3354_p9 = por %p3353_p3, %p3352_p1 }
 0xda8   : > { %p3355_p11 = pnand %p3354_p9, %p3348_p13 }
 0xdaa   : > { %3358 = shalt.err (!%p3355_p11)
}
 0xdab   : > { %s3488_s10 = smov 16   ;;  %s3489_s1 = smov 1  }
 0xdac   : > { %2902 = dma.vmem_to_hbm [thread:$0]  (%p4535_p12), %s4320_s4, 32, %s4317_s7, %s2318_s5, %s3488_s10, %s3488_s10, %s3489_s1  }
 0xdad PF: > { %s4536_s26 = sld [smem:[#allocation30_spill]]  ;;  %s4537_s20 = sld [smem:[#allocation23_spill]] }
 0xdae   : > { %s4538_s29 = sld [smem:[#allocation36_spill]] }
 0xdb3   : > { %p2931_p2 = scmp.ge.s32.totalorder %s4536_s26, 2  ;;  %s2346_s30 = sand.u32 1, %s4537_s20  }
 0xdb4   : > { %p4539_p0 = scmp.ne.s32.totalorder %s4538_s29, 0  ;;  %s2347_s6 = scalar_lea.sflag [#allocation5], %s2346_s30 }
 0xdb6   : > { %p2925_p10 = pnand %p2931_p2, %p4539_p0 }
 0xdb8   : > { %3424 = dma.done.wait (!%p2925_p10), %s2347_s6, 32  }
 0xdb9   : > { %3426 = vsyncadd (!%p2925_p10), %s2347_s6, 4294967264  ;;  %s40_s1 = sadd.s32 1, %s4536_s26   ;;  %s4540_s24 = sld [smem:[#allocation21_spill]] }
 0xdba   : > { %p37_p4 = scmp.ge.s32.totalorder %s40_s1, 6   ;;  %s4541_s25 = sld [smem:[#allocation22_spill]] }
 0xdbb   : > { %s4542_s26 = sld [smem:[#allocation33_spill]]  ;;  %s4543_s27 = sld [smem:[#allocation24_spill]] }
 0xdbc   : > { %s4544_s28 = sld [smem:[#allocation25_spill]]  ;;  %s4545_s29 = sld [smem:[#allocation34_spill]] }
 0xdbd   : > { %s4546_s0 = sld [smem:[#allocation28_spill]]  ;;  %s4547_s30 = sld [smem:[#allocation29_spill]] }
 0xdbe   : > { %s4548_s18 = sld [smem:[#allocation31_spill]]  ;;  %s4549_s19 = sld [smem:[#allocation32_spill]] }
 0xdbf   :  { %39 = sbr.rel (!%p37_p4) target bundleno = 33 (0x21), region = 221 }
 0xdc6   :  { %2352 = vsyncpa [#allocation4], 1 }
 0xdc7   :  { %2354 = vsyncpa [#allocation4 + $0x1], 1 }
 0xdc8   :  { %2355 = vsyncpa [#allocation7], 1 }
 0xdc9   :  { %2357 = vsyncpa [#allocation7 + $0x1], 1 }
 0xdca   :  { %2358 = vsyncpa [#allocation10], 1 }
 0xdcb   :  { %2360 = vsyncpa [#allocation10 + $0x1], 1 }
 0xdcc   :  { %2361 = vsyncpa [#allocation13], 1 }
 0xdcd   :  { %2363 = vsyncpa [#allocation13 + $0x1], 1 }
 0xdce   :  { %2364 = vsyncpa [#allocation5], 1 }
 0xdcf   :  { %2366 = vsyncpa [#allocation5 + $0x1], 1 }

</bundles_post_ra>
